<compile_context>
chip_gen: v7x
topology: tpu7x:2x2x1
jax: 0.10.0
libtpu: 0.0.40
codegen_flags: <defaults>
</compile_context>

<pallas_src>
import math
from functools import partial

import numpy as np
import jax
import jax.numpy as jnp
from jax.experimental import pallas as pl
from jax.experimental.pallas import tpu as pltpu


# ----------------------------------------------------------------------------
# Host-side construction of the folded (pad + crop + lanczos + bicubic) matrices
# ----------------------------------------------------------------------------
def _lanczos_kernel_1d(ratio):
    """lanczos(ramp(ratio, 2), 2) from the reference code (normalized)."""
    n = math.ceil(2.0 / ratio + 1)
    out = np.arange(n, dtype=np.float64) * ratio
    x = np.concatenate([-out[1:][::-1], out])[1:-1]

    def _sinc(v):
        return np.where(v != 0, np.sin(np.pi * v) / (np.pi * v), 1.0)

    cond = np.logical_and(-2.0 < x, x < 2.0)
    k = np.where(cond, _sinc(x) * _sinc(x / 2.0), 0.0)
    return k / k.sum()


def _lanczos_matrix(s, ratio):
    """[s, s] matrix of the lanczos prefilter conv with torch 'reflect' padding."""
    k = _lanczos_kernel_1d(ratio)
    K = k.shape[0]
    pad = (K - 1) // 2
    i = np.arange(s)[:, None]
    j = np.arange(K)[None, :]
    src = i + j - pad                       # virtual input index
    src = np.where(src < 0, -src, src)      # reflect (no edge repeat)
    src = np.where(src >= s, 2 * s - 2 - src, src)
    src = np.clip(src, 0, s - 1)
    L = np.zeros((s, s), np.float64)
    np.add.at(L, (np.broadcast_to(i, src.shape), src), np.broadcast_to(k, src.shape))
    return L


def _cubic_w(t, a=-0.75):
    at = abs(t)
    if at <= 1.0:
        return (a + 2.0) * at**3 - (a + 3.0) * at**2 + 1.0
    if at < 2.0:
        return a * at**3 - 5.0 * a * at**2 + 8.0 * a * at - 4.0 * a
    return 0.0


def _bicubic_matrix(s_in, s_out):
    """[s_out, s_in] PyTorch bicubic interpolation matrix, align_corners=True."""
    B = np.zeros((s_out, s_in), np.float64)
    for i in range(s_out):
        x = 0.0 if s_out == 1 else i * (s_in - 1) / (s_out - 1)
        x0 = int(np.floor(x))
        frac = x - x0
        for m in range(-1, 3):
            idx = min(max(x0 + m, 0), s_in - 1)
            B[i, idx] += _cubic_w(m - frac)
    return B


def _axis_matrix(in_size, pad, offset, crop_size, cut_size):
    """[cut_size, in_size] matrix acting on the UNPADDED axis: folds zero padding,
    the crop window [offset, offset+crop_size) of the padded axis, the lanczos
    antialias prefilter (only if downscaling) and bicubic align_corners resize."""
    B = _bicubic_matrix(crop_size, cut_size)
    if cut_size < crop_size:
        R = B @ _lanczos_matrix(crop_size, cut_size / crop_size)
    else:
        R = B
    A = np.zeros((cut_size, in_size), np.float64)
    h = np.arange(in_size)
    r = h + pad - offset                    # crop-local index of unpadded row h
    valid = (r >= 0) & (r < crop_size)
    A[:, valid] = R[:, r[valid]]
    return A


def _build_matrices(H, W, cut_size, cutn, seed):
    """Stacked row matrix A [cutn*cs, H] and col matrices Bt [cutn, W, cs]."""
    pad = H // 4                            # T.Pad(input.shape[2] // 4, fill=0)
    sideY, sideX = H + 2 * pad, W + 2 * pad
    max_size = min(sideX, sideY)
    rng = np.random.RandomState(seed)
    A_rows, B_cols = [], []
    for ch in range(cutn):
        if ch > cutn - cutn // 4:
            oy, ox, sy, sx = 0, 0, sideY, sideX           # full padded frame
        else:
            ratio = float(np.clip(rng.normal(0.8, 0.3), cut_size / max_size, 1.0))
            size = max(int(max_size * ratio), cut_size)
            ox = int(rng.randint(0, abs(sideX - size + 1)))
            oy = int(rng.randint(0, abs(sideY - size + 1)))
            sy = sx = size
        A_rows.append(_axis_matrix(H, pad, oy, sy, cut_size))
        B_cols.append(_axis_matrix(W, pad, ox, sx, cut_size).T)
    A = np.concatenate(A_rows, axis=0).astype(np.float32)    # [cutn*cs, H]
    Bt = np.stack(B_cols, axis=0).astype(np.float32)         # [cutn, W, cs]
    return A, Bt


# ----------------------------------------------------------------------------
# Pallas kernel
# ----------------------------------------------------------------------------
def _cutouts_kernel(x_ref, a_ref, bt_ref, out_ref, t_ref, *, cutn, nch, cs):
    """x_ref:  [nch, TH, W]   image H-tile (nch = N*C channels)
       a_ref:  [cutn*cs, TH]  stacked row-resize matrices, H-tile slice
       bt_ref: [cutn, W, cs]  col-resize matrices (transposed)
       out_ref:[cutn, cs, nch*cs]  lane-dense stacked output
       t_ref:  [nch, cutn*cs, W]   stage-1 accumulator scratch."""
    h = pl.program_id(0)

    @pl.when(h == 0)
    def _init():
        t_ref[...] = jnp.zeros_like(t_ref)

    # Stage 1: partial row-resize of this H tile for every cutout at once
    # (all cutouts stacked on the MXU M axis -> one matmul per channel).
    a = a_ref[...]                                            # [cutn*cs, TH]
    for c in range(nch):
        t_ref[c] += jnp.dot(a, x_ref[c], preferred_element_type=jnp.float32)

    # Stage 2 (last H tile only): column resize + store.
    @pl.when(h == pl.num_programs(0) - 1)
    def _finish():
        for k in range(cutn):
            b_k = bt_ref[k]                                   # [W, cs]
            for c in range(nch):
                part = jnp.dot(t_ref[c, k * cs:(k + 1) * cs, :], b_k,
                               preferred_element_type=jnp.float32)   # [cs, cs]
                out_ref[k, :, c * cs:(c + 1) * cs] = part


def make_cutouts(x, cut_size=8, cutn=8, seed=0):
    """x: [N, C, H, W] float32. Returns [cutn*N, C, cut_size, cut_size]."""
    x = jnp.asarray(x, jnp.float32)
    N, C, H, W = x.shape
    NCH = N * C
    cs = cut_size

    A, Bt = _build_matrices(H, W, cs, cutn, seed)             # host glue
    x_chw = x.reshape(NCH, H, W)

    # --- choose H tiling: single block if the image is small, else tile H so the
    # double-buffered image DMA stays well under v7x's 64 MiB (32 MiB scoped) VMEM.
    x_bytes = NCH * H * W * 4
    if x_bytes <= (8 << 20):
        TH, Hp = H, H
    else:
        TH = 256 if W <= 2048 else 128                        # multiple of 128
        Hp = ((H + TH - 1) // TH) * TH
        if Hp != H:
            # small zero-pad to a tile multiple; zero A columns keep it exact
            x_chw = jnp.pad(x_chw, ((0, 0), (0, Hp - H), (0, 0)))
            A = np.pad(A, ((0, 0), (0, Hp - H)))
    grid = (Hp // TH,)

    A_j = jnp.asarray(A)                                      # [cutn*cs, Hp]
    Bt_j = jnp.asarray(Bt)                                    # [cutn, W, cs]

    est_vmem = (2 * NCH * TH * W + 2 * cutn * cs * TH + cutn * W * cs
                + NCH * cutn * cs * W + cutn * cs * NCH * cs) * 4
    vmem_limit = int(max(32 << 20, min(est_vmem * 2, 48 << 20)))

    out = pl.pallas_call(
        partial(_cutouts_kernel, cutn=cutn, nch=NCH, cs=cs),
        out_shape=jax.ShapeDtypeStruct((cutn, cs, NCH * cs), jnp.float32),
        grid_spec=pltpu.PrefetchScalarGridSpec(
            num_scalar_prefetch=0,
            grid=grid,
            in_specs=[
                pl.BlockSpec((NCH, TH, W), lambda h: (0, h, 0)),       # image H tile
                pl.BlockSpec((cutn * cs, TH), lambda h: (0, h)),       # A H slice
                pl.BlockSpec((cutn, W, cs), lambda h: (0, 0, 0)),      # Bt resident
            ],
            out_specs=pl.BlockSpec((cutn, cs, NCH * cs), lambda h: (0, 0, 0)),
            scratch_shapes=[pltpu.VMEM((NCH, cutn * cs, W), jnp.float32)],
        ),
        compiler_params=pltpu.CompilerParams(
            dimension_semantics=("arbitrary",),   # H is a reduction axis
            vmem_limit_bytes=vmem_limit,
        ),
    )(x_chw, A_j, Bt_j)

    # [cutn, cs, N*C*cs] -> [cutn*N, C, cs, cs]  (torch.cat(cutouts, dim=0) order)
    out = out.reshape(cutn, cs, N, C, cs)
    out = jnp.transpose(out, (0, 2, 3, 1, 4))
    return out.reshape(cutn * N, C, cs, cs)


# ----------------------------------------------------------------------------
# Pure-numpy reference of the same math (same folded matrices, float64 einsum)
# ----------------------------------------------------------------------------
def _reference(x_np, cut_size, cutn, seed):
    N, C, H, W = x_np.shape
    A, Bt = _build_matrices(H, W, cut_size, cutn, seed)
    A3 = A.reshape(cutn, cut_size, H).astype(np.float64)
    xr = np.asarray(x_np, np.float64).reshape(N * C, H, W)
    out = np.einsum('kah,chw,kwb->kcab', A3, xr, Bt.astype(np.float64))
    out = out.reshape(cutn, N, C, cut_size, cut_size)
    return out.reshape(cutn * N, C, cut_size, cut_size)


if __name__ == "__main__":
    key = jax.random.PRNGKey(0)
    N, C, H, W = 1, 3, 16, 16
    CUT_SIZE, CUTN, SEED = 8, 8, 0

    x = jax.random.uniform(key, (N, C, H, W), dtype=jnp.float32)

    out = make_cutouts(x, cut_size=CUT_SIZE, cutn=CUTN, seed=SEED)
    out = jax.block_until_ready(out)

    ref = _reference(np.asarray(x), CUT_SIZE, CUTN, seed=SEED)
    assert out.shape == (CUTN * N, C, CUT_SIZE, CUT_SIZE), out.shape
    err = float(np.max(np.abs(np.asarray(out) - ref)))
    assert err < 2e-3, err

    print("KERNEL_OK")
</pallas_src>

<mosaic_0001>
module attributes {stable_mosaic.version = 11 : i64} {
  func.func @_cutouts_kernel(%arg0: i32, %arg1: memref<3x16x16xf32, #tpu.memory_space<vmem>>, %arg2: memref<64x16xf32, #tpu.memory_space<vmem>>, %arg3: memref<8x16x8xf32, #tpu.memory_space<vmem>>, %arg4: memref<8x8x24xf32, #tpu.memory_space<vmem>>, %arg5: memref<3x64x16xf32, #tpu.memory_space<vmem>>) attributes {dimension_semantics = [#tpu.dimension_semantics<arbitrary>], iteration_bounds = array<i64: 1>, scalar_prefetch = 0 : i64, scratch_operands = 1 : i64, tpu.core_type = #tpu.core_type<tc>, window_params = [{transform_indices = @transform_0, window_bounds = array<i64: 3, 16, 16>}, {transform_indices = @transform_1, window_bounds = array<i64: 64, 16>}, {pipeline_mode = #tpu.pipeline_mode<synchronous>, transform_indices = @transform_2, window_bounds = array<i64: 8, 16, 8>}, {pipeline_mode = #tpu.pipeline_mode<synchronous>, transform_indices = @transform_3, window_bounds = array<i64: 8, 8, 24>}]} {
    %c0_i32 = arith.constant 0 : i32
    %0 = arith.cmpi eq, %arg0, %c0_i32 : i32
    %1 = arith.extui %0 : i1 to i32
    %c0_i32_0 = arith.constant 0 : i32
    %2 = arith.cmpi ne, %1, %c0_i32_0 : i32
    scf.if %2 {
      %cst_31 = arith.constant 0.000000e+00 : f32
      %34 = vector.broadcast %cst_31 : f32 to vector<3x64x16xf32>
      %c0_32 = arith.constant 0 : index
      %c0_33 = arith.constant 0 : index
      %c0_34 = arith.constant 0 : index
      %35 = vector.load %arg5[%c0_32, %c0_33, %c0_34] : memref<3x64x16xf32, #tpu.memory_space<vmem>>, vector<3x64x16xf32>
      tpu.vector_store %arg5[%c0_32, %c0_33, %c0_34], %34 {strides = array<i32>} : memref<3x64x16xf32, #tpu.memory_space<vmem>>, vector<3x64x16xf32>,
    } else {
    }
    %c0 = arith.constant 0 : index
    %c0_1 = arith.constant 0 : index
    %3 = vector.load %arg2[%c0, %c0_1] : memref<64x16xf32, #tpu.memory_space<vmem>>, vector<64x16xf32>
    %c0_2 = arith.constant 0 : index
    %c0_3 = arith.constant 0 : index
    %c0_4 = arith.constant 0 : index
    %4 = vector.load %arg5[%c0_2, %c0_3, %c0_4] : memref<3x64x16xf32, #tpu.memory_space<vmem>>, vector<1x64x16xf32>
    %5 = vector.shape_cast %4 : vector<1x64x16xf32> to vector<64x16xf32>
    %c0_5 = arith.constant 0 : index
    %c0_6 = arith.constant 0 : index
    %c0_7 = arith.constant 0 : index
    %6 = vector.load %arg1[%c0_5, %c0_6, %c0_7] : memref<3x16x16xf32, #tpu.memory_space<vmem>>, vector<1x16x16xf32>
    %7 = vector.shape_cast %6 : vector<1x16x16xf32> to vector<16x16xf32>
    %cst = arith.constant dense<0.000000e+00> : vector<64x16xf32>
    %8 = tpu.matmul %3, %7, %cst {dimension_numbers = #tpu.dot_dimension_numbers<[1], [0], [0], [1], [0, 0, 1, 1], [], []>} : vector<64x16xf32>, vector<16x16xf32>, vector<64x16xf32> -> vector<64x16xf32>
    %9 = arith.addf %5, %8 : vector<64x16xf32>
    %c0_8 = arith.constant 0 : index
    %c0_9 = arith.constant 0 : index
    %c0_10 = arith.constant 0 : index
    %10 = vector.load %arg5[%c0_8, %c0_9, %c0_10] : memref<3x64x16xf32, #tpu.memory_space<vmem>>, vector<1x64x16xf32>
    %11 = vector.shape_cast %10 : vector<1x64x16xf32> to vector<64x16xf32>
    %12 = vector.shape_cast %9 : vector<64x16xf32> to vector<1x64x16xf32>
    tpu.vector_store %arg5[%c0_8, %c0_9, %c0_10], %12 {strides = array<i32>} : memref<3x64x16xf32, #tpu.memory_space<vmem>>, vector<1x64x16xf32>,
    %c1 = arith.constant 1 : index
    %c0_11 = arith.constant 0 : index
    %c0_12 = arith.constant 0 : index
    %13 = vector.load %arg5[%c1, %c0_11, %c0_12] : memref<3x64x16xf32, #tpu.memory_space<vmem>>, vector<1x64x16xf32>
    %14 = vector.shape_cast %13 : vector<1x64x16xf32> to vector<64x16xf32>
    %c1_13 = arith.constant 1 : index
    %c0_14 = arith.constant 0 : index
    %c0_15 = arith.constant 0 : index
    %15 = vector.load %arg1[%c1_13, %c0_14, %c0_15] : memref<3x16x16xf32, #tpu.memory_space<vmem>>, vector<1x16x16xf32>
    %16 = vector.shape_cast %15 : vector<1x16x16xf32> to vector<16x16xf32>
    %cst_16 = arith.constant dense<0.000000e+00> : vector<64x16xf32>
    %17 = tpu.matmul %3, %16, %cst_16 {dimension_numbers = #tpu.dot_dimension_numbers<[1], [0], [0], [1], [0, 0, 1, 1], [], []>} : vector<64x16xf32>, vector<16x16xf32>, vector<64x16xf32> -> vector<64x16xf32>
    %18 = arith.addf %14, %17 : vector<64x16xf32>
    %c1_17 = arith.constant 1 : index
    %c0_18 = arith.constant 0 : index
    %c0_19 = arith.constant 0 : index
    %19 = vector.load %arg5[%c1_17, %c0_18, %c0_19] : memref<3x64x16xf32, #tpu.memory_space<vmem>>, vector<1x64x16xf32>
    %20 = vector.shape_cast %19 : vector<1x64x16xf32> to vector<64x16xf32>
    %21 = vector.shape_cast %18 : vector<64x16xf32> to vector<1x64x16xf32>
    tpu.vector_store %arg5[%c1_17, %c0_18, %c0_19], %21 {strides = array<i32>} : memref<3x64x16xf32, #tpu.memory_space<vmem>>, vector<1x64x16xf32>,
    %c2 = arith.constant 2 : index
    %c0_20 = arith.constant 0 : index
    %c0_21 = arith.constant 0 : index
    %22 = vector.load %arg5[%c2, %c0_20, %c0_21] : memref<3x64x16xf32, #tpu.memory_space<vmem>>, vector<1x64x16xf32>
    %23 = vector.shape_cast %22 : vector<1x64x16xf32> to vector<64x16xf32>
    %c2_22 = arith.constant 2 : index
    %c0_23 = arith.constant 0 : index
    %c0_24 = arith.constant 0 : index
    %24 = vector.load %arg1[%c2_22, %c0_23, %c0_24] : memref<3x16x16xf32, #tpu.memory_space<vmem>>, vector<1x16x16xf32>
    %25 = vector.shape_cast %24 : vector<1x16x16xf32> to vector<16x16xf32>
    %cst_25 = arith.constant dense<0.000000e+00> : vector<64x16xf32>
    %26 = tpu.matmul %3, %25, %cst_25 {dimension_numbers = #tpu.dot_dimension_numbers<[1], [0], [0], [1], [0, 0, 1, 1], [], []>} : vector<64x16xf32>, vector<16x16xf32>, vector<64x16xf32> -> vector<64x16xf32>
    %27 = arith.addf %23, %26 : vector<64x16xf32>
    %c2_26 = arith.constant 2 : index
    %c0_27 = arith.constant 0 : index
    %c0_28 = arith.constant 0 : index
    %28 = vector.load %arg5[%c2_26, %c0_27, %c0_28] : memref<3x64x16xf32, #tpu.memory_space<vmem>>, vector<1x64x16xf32>
    %29 = vector.shape_cast %28 : vector<1x64x16xf32> to vector<64x16xf32>
    %30 = vector.shape_cast %27 : vector<64x16xf32> to vector<1x64x16xf32>
    tpu.vector_store %arg5[%c2_26, %c0_27, %c0_28], %30 {strides = array<i32>} : memref<3x64x16xf32, #tpu.memory_space<vmem>>, vector<1x64x16xf32>,
    %c0_i32_29 = arith.constant 0 : i32
    %31 = arith.cmpi eq, %arg0, %c0_i32_29 : i32
    %32 = arith.extui %31 : i1 to i32
    %c0_i32_30 = arith.constant 0 : i32
    %33 = arith.cmpi ne, %32, %c0_i32_30 : i32
    scf.if %33 {
      %c0_31 = arith.constant 0 : index
      %c0_32 = arith.constant 0 : index
      %c0_33 = arith.constant 0 : index
      %34 = vector.load %arg3[%c0_31, %c0_32, %c0_33] : memref<8x16x8xf32, #tpu.memory_space<vmem>>, vector<1x16x8xf32>
      %35 = vector.shape_cast %34 : vector<1x16x8xf32> to vector<16x8xf32>
      %c0_34 = arith.constant 0 : index
      %c0_35 = arith.constant 0 : index
      %c0_36 = arith.constant 0 : index
      %36 = vector.load %arg5[%c0_34, %c0_35, %c0_36] : memref<3x64x16xf32, #tpu.memory_space<vmem>>, vector<1x8x16xf32>
      %37 = vector.shape_cast %36 : vector<1x8x16xf32> to vector<8x16xf32>
      %cst_37 = arith.constant dense<0.000000e+00> : vector<8x8xf32>
      %38 = tpu.matmul %37, %35, %cst_37 {dimension_numbers = #tpu.dot_dimension_numbers<[1], [0], [0], [1], [0, 0, 1, 1], [], []>} : vector<8x16xf32>, vector<16x8xf32>, vector<8x8xf32> -> vector<8x8xf32>
      %c0_38 = arith.constant 0 : index
      %c0_39 = arith.constant 0 : index
      %c0_40 = arith.constant 0 : index
      %39 = vector.load %arg4[%c0_38, %c0_39, %c0_40] : memref<8x8x24xf32, #tpu.memory_space<vmem>>, vector<1x8x8xf32>
      %40 = vector.shape_cast %39 : vector<1x8x8xf32> to vector<8x8xf32>
      %41 = vector.shape_cast %38 : vector<8x8xf32> to vector<1x8x8xf32>
      tpu.vector_store %arg4[%c0_38, %c0_39, %c0_40], %41 {strides = array<i32>} : memref<8x8x24xf32, #tpu.memory_space<vmem>>, vector<1x8x8xf32>,
      %c1_41 = arith.constant 1 : index
      %c0_42 = arith.constant 0 : index
      %c0_43 = arith.constant 0 : index
      %42 = vector.load %arg5[%c1_41, %c0_42, %c0_43] : memref<3x64x16xf32, #tpu.memory_space<vmem>>, vector<1x8x16xf32>
      %43 = vector.shape_cast %42 : vector<1x8x16xf32> to vector<8x16xf32>
      %cst_44 = arith.constant dense<0.000000e+00> : vector<8x8xf32>
      %44 = tpu.matmul %43, %35, %cst_44 {dimension_numbers = #tpu.dot_dimension_numbers<[1], [0], [0], [1], [0, 0, 1, 1], [], []>} : vector<8x16xf32>, vector<16x8xf32>, vector<8x8xf32> -> vector<8x8xf32>
      %c0_45 = arith.constant 0 : index
      %c0_46 = arith.constant 0 : index
      %c8 = arith.constant 8 : index
      %45 = vector.load %arg4[%c0_45, %c0_46, %c8] : memref<8x8x24xf32, #tpu.memory_space<vmem>>, vector<1x8x8xf32>
      %46 = vector.shape_cast %45 : vector<1x8x8xf32> to vector<8x8xf32>
      %47 = vector.shape_cast %44 : vector<8x8xf32> to vector<1x8x8xf32>
      tpu.vector_store %arg4[%c0_45, %c0_46, %c8], %47 {strides = array<i32>} : memref<8x8x24xf32, #tpu.memory_space<vmem>>, vector<1x8x8xf32>,
      %c2_47 = arith.constant 2 : index
      %c0_48 = arith.constant 0 : index
      %c0_49 = arith.constant 0 : index
      %48 = vector.load %arg5[%c2_47, %c0_48, %c0_49] : memref<3x64x16xf32, #tpu.memory_space<vmem>>, vector<1x8x16xf32>
      %49 = vector.shape_cast %48 : vector<1x8x16xf32> to vector<8x16xf32>
      %cst_50 = arith.constant dense<0.000000e+00> : vector<8x8xf32>
      %50 = tpu.matmul %49, %35, %cst_50 {dimension_numbers = #tpu.dot_dimension_numbers<[1], [0], [0], [1], [0, 0, 1, 1], [], []>} : vector<8x16xf32>, vector<16x8xf32>, vector<8x8xf32> -> vector<8x8xf32>
      %c0_51 = arith.constant 0 : index
      %c0_52 = arith.constant 0 : index
      %c16 = arith.constant 16 : index
      %51 = vector.load %arg4[%c0_51, %c0_52, %c16] : memref<8x8x24xf32, #tpu.memory_space<vmem>>, vector<1x8x8xf32>
      %52 = vector.shape_cast %51 : vector<1x8x8xf32> to vector<8x8xf32>
      %53 = vector.shape_cast %50 : vector<8x8xf32> to vector<1x8x8xf32>
      tpu.vector_store %arg4[%c0_51, %c0_52, %c16], %53 {strides = array<i32>} : memref<8x8x24xf32, #tpu.memory_space<vmem>>, vector<1x8x8xf32>,
      %c1_53 = arith.constant 1 : index
      %c0_54 = arith.constant 0 : index
      %c0_55 = arith.constant 0 : index
      %54 = vector.load %arg3[%c1_53, %c0_54, %c0_55] : memref<8x16x8xf32, #tpu.memory_space<vmem>>, vector<1x16x8xf32>
      %55 = vector.shape_cast %54 : vector<1x16x8xf32> to vector<16x8xf32>
      %c0_56 = arith.constant 0 : index
      %c8_57 = arith.constant 8 : index
      %c0_58 = arith.constant 0 : index
      %56 = vector.load %arg5[%c0_56, %c8_57, %c0_58] : memref<3x64x16xf32, #tpu.memory_space<vmem>>, vector<1x8x16xf32>
      %57 = vector.shape_cast %56 : vector<1x8x16xf32> to vector<8x16xf32>
      %cst_59 = arith.constant dense<0.000000e+00> : vector<8x8xf32>
      %58 = tpu.matmul %57, %55, %cst_59 {dimension_numbers = #tpu.dot_dimension_numbers<[1], [0], [0], [1], [0, 0, 1, 1], [], []>} : vector<8x16xf32>, vector<16x8xf32>, vector<8x8xf32> -> vector<8x8xf32>
      %c1_60 = arith.constant 1 : index
      %c0_61 = arith.constant 0 : index
      %c0_62 = arith.constant 0 : index
      %59 = vector.load %arg4[%c1_60, %c0_61, %c0_62] : memref<8x8x24xf32, #tpu.memory_space<vmem>>, vector<1x8x8xf32>
      %60 = vector.shape_cast %59 : vector<1x8x8xf32> to vector<8x8xf32>
      %61 = vector.shape_cast %58 : vector<8x8xf32> to vector<1x8x8xf32>
      tpu.vector_store %arg4[%c1_60, %c0_61, %c0_62], %61 {strides = array<i32>} : memref<8x8x24xf32, #tpu.memory_space<vmem>>, vector<1x8x8xf32>,
      %c1_63 = arith.constant 1 : index
      %c8_64 = arith.constant 8 : index
      %c0_65 = arith.constant 0 : index
      %62 = vector.load %arg5[%c1_63, %c8_64, %c0_65] : memref<3x64x16xf32, #tpu.memory_space<vmem>>, vector<1x8x16xf32>
      %63 = vector.shape_cast %62 : vector<1x8x16xf32> to vector<8x16xf32>
      %cst_66 = arith.constant dense<0.000000e+00> : vector<8x8xf32>
      %64 = tpu.matmul %63, %55, %cst_66 {dimension_numbers = #tpu.dot_dimension_numbers<[1], [0], [0], [1], [0, 0, 1, 1], [], []>} : vector<8x16xf32>, vector<16x8xf32>, vector<8x8xf32> -> vector<8x8xf32>
      %c1_67 = arith.constant 1 : index
      %c0_68 = arith.constant 0 : index
      %c8_69 = arith.constant 8 : index
      %65 = vector.load %arg4[%c1_67, %c0_68, %c8_69] : memref<8x8x24xf32, #tpu.memory_space<vmem>>, vector<1x8x8xf32>
      %66 = vector.shape_cast %65 : vector<1x8x8xf32> to vector<8x8xf32>
      %67 = vector.shape_cast %64 : vector<8x8xf32> to vector<1x8x8xf32>
      tpu.vector_store %arg4[%c1_67, %c0_68, %c8_69], %67 {strides = array<i32>} : memref<8x8x24xf32, #tpu.memory_space<vmem>>, vector<1x8x8xf32>,
      %c2_70 = arith.constant 2 : index
      %c8_71 = arith.constant 8 : index
      %c0_72 = arith.constant 0 : index
      %68 = vector.load %arg5[%c2_70, %c8_71, %c0_72] : memref<3x64x16xf32, #tpu.memory_space<vmem>>, vector<1x8x16xf32>
      %69 = vector.shape_cast %68 : vector<1x8x16xf32> to vector<8x16xf32>
      %cst_73 = arith.constant dense<0.000000e+00> : vector<8x8xf32>
      %70 = tpu.matmul %69, %55, %cst_73 {dimension_numbers = #tpu.dot_dimension_numbers<[1], [0], [0], [1], [0, 0, 1, 1], [], []>} : vector<8x16xf32>, vector<16x8xf32>, vector<8x8xf32> -> vector<8x8xf32>
      %c1_74 = arith.constant 1 : index
      %c0_75 = arith.constant 0 : index
      %c16_76 = arith.constant 16 : index
      %71 = vector.load %arg4[%c1_74, %c0_75, %c16_76] : memref<8x8x24xf32, #tpu.memory_space<vmem>>, vector<1x8x8xf32>
      %72 = vector.shape_cast %71 : vector<1x8x8xf32> to vector<8x8xf32>
      %73 = vector.shape_cast %70 : vector<8x8xf32> to vector<1x8x8xf32>
      tpu.vector_store %arg4[%c1_74, %c0_75, %c16_76], %73 {strides = array<i32>} : memref<8x8x24xf32, #tpu.memory_space<vmem>>, vector<1x8x8xf32>,
      %c2_77 = arith.constant 2 : index
      %c0_78 = arith.constant 0 : index
      %c0_79 = arith.constant 0 : index
      %74 = vector.load %arg3[%c2_77, %c0_78, %c0_79] : memref<8x16x8xf32, #tpu.memory_space<vmem>>, vector<1x16x8xf32>
      %75 = vector.shape_cast %74 : vector<1x16x8xf32> to vector<16x8xf32>
      %c0_80 = arith.constant 0 : index
      %c16_81 = arith.constant 16 : index
      %c0_82 = arith.constant 0 : index
      %76 = vector.load %arg5[%c0_80, %c16_81, %c0_82] : memref<3x64x16xf32, #tpu.memory_space<vmem>>, vector<1x8x16xf32>
      %77 = vector.shape_cast %76 : vector<1x8x16xf32> to vector<8x16xf32>
      %cst_83 = arith.constant dense<0.000000e+00> : vector<8x8xf32>
      %78 = tpu.matmul %77, %75, %cst_83 {dimension_numbers = #tpu.dot_dimension_numbers<[1], [0], [0], [1], [0, 0, 1, 1], [], []>} : vector<8x16xf32>, vector<16x8xf32>, vector<8x8xf32> -> vector<8x8xf32>
      %c2_84 = arith.constant 2 : index
      %c0_85 = arith.constant 0 : index
      %c0_86 = arith.constant 0 : index
      %79 = vector.load %arg4[%c2_84, %c0_85, %c0_86] : memref<8x8x24xf32, #tpu.memory_space<vmem>>, vector<1x8x8xf32>
      %80 = vector.shape_cast %79 : vector<1x8x8xf32> to vector<8x8xf32>
      %81 = vector.shape_cast %78 : vector<8x8xf32> to vector<1x8x8xf32>
      tpu.vector_store %arg4[%c2_84, %c0_85, %c0_86], %81 {strides = array<i32>} : memref<8x8x24xf32, #tpu.memory_space<vmem>>, vector<1x8x8xf32>,
      %c1_87 = arith.constant 1 : index
      %c16_88 = arith.constant 16 : index
      %c0_89 = arith.constant 0 : index
      %82 = vector.load %arg5[%c1_87, %c16_88, %c0_89] : memref<3x64x16xf32, #tpu.memory_space<vmem>>, vector<1x8x16xf32>
      %83 = vector.shape_cast %82 : vector<1x8x16xf32> to vector<8x16xf32>
      %cst_90 = arith.constant dense<0.000000e+00> : vector<8x8xf32>
      %84 = tpu.matmul %83, %75, %cst_90 {dimension_numbers = #tpu.dot_dimension_numbers<[1], [0], [0], [1], [0, 0, 1, 1], [], []>} : vector<8x16xf32>, vector<16x8xf32>, vector<8x8xf32> -> vector<8x8xf32>
      %c2_91 = arith.constant 2 : index
      %c0_92 = arith.constant 0 : index
      %c8_93 = arith.constant 8 : index
      %85 = vector.load %arg4[%c2_91, %c0_92, %c8_93] : memref<8x8x24xf32, #tpu.memory_space<vmem>>, vector<1x8x8xf32>
      %86 = vector.shape_cast %85 : vector<1x8x8xf32> to vector<8x8xf32>
      %87 = vector.shape_cast %84 : vector<8x8xf32> to vector<1x8x8xf32>
      tpu.vector_store %arg4[%c2_91, %c0_92, %c8_93], %87 {strides = array<i32>} : memref<8x8x24xf32, #tpu.memory_space<vmem>>, vector<1x8x8xf32>,
      %c2_94 = arith.constant 2 : index
      %c16_95 = arith.constant 16 : index
      %c0_96 = arith.constant 0 : index
      %88 = vector.load %arg5[%c2_94, %c16_95, %c0_96] : memref<3x64x16xf32, #tpu.memory_space<vmem>>, vector<1x8x16xf32>
      %89 = vector.shape_cast %88 : vector<1x8x16xf32> to vector<8x16xf32>
      %cst_97 = arith.constant dense<0.000000e+00> : vector<8x8xf32>
      %90 = tpu.matmul %89, %75, %cst_97 {dimension_numbers = #tpu.dot_dimension_numbers<[1], [0], [0], [1], [0, 0, 1, 1], [], []>} : vector<8x16xf32>, vector<16x8xf32>, vector<8x8xf32> -> vector<8x8xf32>
      %c2_98 = arith.constant 2 : index
      %c0_99 = arith.constant 0 : index
      %c16_100 = arith.constant 16 : index
      %91 = vector.load %arg4[%c2_98, %c0_99, %c16_100] : memref<8x8x24xf32, #tpu.memory_space<vmem>>, vector<1x8x8xf32>
      %92 = vector.shape_cast %91 : vector<1x8x8xf32> to vector<8x8xf32>
      %93 = vector.shape_cast %90 : vector<8x8xf32> to vector<1x8x8xf32>
      tpu.vector_store %arg4[%c2_98, %c0_99, %c16_100], %93 {strides = array<i32>} : memref<8x8x24xf32, #tpu.memory_space<vmem>>, vector<1x8x8xf32>,
      %c3 = arith.constant 3 : index
      %c0_101 = arith.constant 0 : index
      %c0_102 = arith.constant 0 : index
      %94 = vector.load %arg3[%c3, %c0_101, %c0_102] : memref<8x16x8xf32, #tpu.memory_space<vmem>>, vector<1x16x8xf32>
      %95 = vector.shape_cast %94 : vector<1x16x8xf32> to vector<16x8xf32>
      %c0_103 = arith.constant 0 : index
      %c24 = arith.constant 24 : index
      %c0_104 = arith.constant 0 : index
      %96 = vector.load %arg5[%c0_103, %c24, %c0_104] : memref<3x64x16xf32, #tpu.memory_space<vmem>>, vector<1x8x16xf32>
      %97 = vector.shape_cast %96 : vector<1x8x16xf32> to vector<8x16xf32>
      %cst_105 = arith.constant dense<0.000000e+00> : vector<8x8xf32>
      %98 = tpu.matmul %97, %95, %cst_105 {dimension_numbers = #tpu.dot_dimension_numbers<[1], [0], [0], [1], [0, 0, 1, 1], [], []>} : vector<8x16xf32>, vector<16x8xf32>, vector<8x8xf32> -> vector<8x8xf32>
      %c3_106 = arith.constant 3 : index
      %c0_107 = arith.constant 0 : index
      %c0_108 = arith.constant 0 : index
      %99 = vector.load %arg4[%c3_106, %c0_107, %c0_108] : memref<8x8x24xf32, #tpu.memory_space<vmem>>, vector<1x8x8xf32>
      %100 = vector.shape_cast %99 : vector<1x8x8xf32> to vector<8x8xf32>
      %101 = vector.shape_cast %98 : vector<8x8xf32> to vector<1x8x8xf32>
      tpu.vector_store %arg4[%c3_106, %c0_107, %c0_108], %101 {strides = array<i32>} : memref<8x8x24xf32, #tpu.memory_space<vmem>>, vector<1x8x8xf32>,
      %c1_109 = arith.constant 1 : index
      %c24_110 = arith.constant 24 : index
      %c0_111 = arith.constant 0 : index
      %102 = vector.load %arg5[%c1_109, %c24_110, %c0_111] : memref<3x64x16xf32, #tpu.memory_space<vmem>>, vector<1x8x16xf32>
      %103 = vector.shape_cast %102 : vector<1x8x16xf32> to vector<8x16xf32>
      %cst_112 = arith.constant dense<0.000000e+00> : vector<8x8xf32>
      %104 = tpu.matmul %103, %95, %cst_112 {dimension_numbers = #tpu.dot_dimension_numbers<[1], [0], [0], [1], [0, 0, 1, 1], [], []>} : vector<8x16xf32>, vector<16x8xf32>, vector<8x8xf32> -> vector<8x8xf32>
      %c3_113 = arith.constant 3 : index
      %c0_114 = arith.constant 0 : index
      %c8_115 = arith.constant 8 : index
      %105 = vector.load %arg4[%c3_113, %c0_114, %c8_115] : memref<8x8x24xf32, #tpu.memory_space<vmem>>, vector<1x8x8xf32>
      %106 = vector.shape_cast %105 : vector<1x8x8xf32> to vector<8x8xf32>
      %107 = vector.shape_cast %104 : vector<8x8xf32> to vector<1x8x8xf32>
      tpu.vector_store %arg4[%c3_113, %c0_114, %c8_115], %107 {strides = array<i32>} : memref<8x8x24xf32, #tpu.memory_space<vmem>>, vector<1x8x8xf32>,
      %c2_116 = arith.constant 2 : index
      %c24_117 = arith.constant 24 : index
      %c0_118 = arith.constant 0 : index
      %108 = vector.load %arg5[%c2_116, %c24_117, %c0_118] : memref<3x64x16xf32, #tpu.memory_space<vmem>>, vector<1x8x16xf32>
      %109 = vector.shape_cast %108 : vector<1x8x16xf32> to vector<8x16xf32>
      %cst_119 = arith.constant dense<0.000000e+00> : vector<8x8xf32>
      %110 = tpu.matmul %109, %95, %cst_119 {dimension_numbers = #tpu.dot_dimension_numbers<[1], [0], [0], [1], [0, 0, 1, 1], [], []>} : vector<8x16xf32>, vector<16x8xf32>, vector<8x8xf32> -> vector<8x8xf32>
      %c3_120 = arith.constant 3 : index
      %c0_121 = arith.constant 0 : index
      %c16_122 = arith.constant 16 : index
      %111 = vector.load %arg4[%c3_120, %c0_121, %c16_122] : memref<8x8x24xf32, #tpu.memory_space<vmem>>, vector<1x8x8xf32>
      %112 = vector.shape_cast %111 : vector<1x8x8xf32> to vector<8x8xf32>
      %113 = vector.shape_cast %110 : vector<8x8xf32> to vector<1x8x8xf32>
      tpu.vector_store %arg4[%c3_120, %c0_121, %c16_122], %113 {strides = array<i32>} : memref<8x8x24xf32, #tpu.memory_space<vmem>>, vector<1x8x8xf32>,
      %c4 = arith.constant 4 : index
      %c0_123 = arith.constant 0 : index
      %c0_124 = arith.constant 0 : index
      %114 = vector.load %arg3[%c4, %c0_123, %c0_124] : memref<8x16x8xf32, #tpu.memory_space<vmem>>, vector<1x16x8xf32>
      %115 = vector.shape_cast %114 : vector<1x16x8xf32> to vector<16x8xf32>
      %c0_125 = arith.constant 0 : index
      %c32 = arith.constant 32 : index
      %c0_126 = arith.constant 0 : index
      %116 = vector.load %arg5[%c0_125, %c32, %c0_126] : memref<3x64x16xf32, #tpu.memory_space<vmem>>, vector<1x8x16xf32>
      %117 = vector.shape_cast %116 : vector<1x8x16xf32> to vector<8x16xf32>
      %cst_127 = arith.constant dense<0.000000e+00> : vector<8x8xf32>
      %118 = tpu.matmul %117, %115, %cst_127 {dimension_numbers = #tpu.dot_dimension_numbers<[1], [0], [0], [1], [0, 0, 1, 1], [], []>} : vector<8x16xf32>, vector<16x8xf32>, vector<8x8xf32> -> vector<8x8xf32>
      %c4_128 = arith.constant 4 : index
      %c0_129 = arith.constant 0 : index
      %c0_130 = arith.constant 0 : index
      %119 = vector.load %arg4[%c4_128, %c0_129, %c0_130] : memref<8x8x24xf32, #tpu.memory_space<vmem>>, vector<1x8x8xf32>
      %120 = vector.shape_cast %119 : vector<1x8x8xf32> to vector<8x8xf32>
      %121 = vector.shape_cast %118 : vector<8x8xf32> to vector<1x8x8xf32>
      tpu.vector_store %arg4[%c4_128, %c0_129, %c0_130], %121 {strides = array<i32>} : memref<8x8x24xf32, #tpu.memory_space<vmem>>, vector<1x8x8xf32>,
      %c1_131 = arith.constant 1 : index
      %c32_132 = arith.constant 32 : index
      %c0_133 = arith.constant 0 : index
      %122 = vector.load %arg5[%c1_131, %c32_132, %c0_133] : memref<3x64x16xf32, #tpu.memory_space<vmem>>, vector<1x8x16xf32>
      %123 = vector.shape_cast %122 : vector<1x8x16xf32> to vector<8x16xf32>
      %cst_134 = arith.constant dense<0.000000e+00> : vector<8x8xf32>
      %124 = tpu.matmul %123, %115, %cst_134 {dimension_numbers = #tpu.dot_dimension_numbers<[1], [0], [0], [1], [0, 0, 1, 1], [], []>} : vector<8x16xf32>, vector<16x8xf32>, vector<8x8xf32> -> vector<8x8xf32>
      %c4_135 = arith.constant 4 : index
      %c0_136 = arith.constant 0 : index
      %c8_137 = arith.constant 8 : index
      %125 = vector.load %arg4[%c4_135, %c0_136, %c8_137] : memref<8x8x24xf32, #tpu.memory_space<vmem>>, vector<1x8x8xf32>
      %126 = vector.shape_cast %125 : vector<1x8x8xf32> to vector<8x8xf32>
      %127 = vector.shape_cast %124 : vector<8x8xf32> to vector<1x8x8xf32>
      tpu.vector_store %arg4[%c4_135, %c0_136, %c8_137], %127 {strides = array<i32>} : memref<8x8x24xf32, #tpu.memory_space<vmem>>, vector<1x8x8xf32>,
      %c2_138 = arith.constant 2 : index
      %c32_139 = arith.constant 32 : index
      %c0_140 = arith.constant 0 : index
      %128 = vector.load %arg5[%c2_138, %c32_139, %c0_140] : memref<3x64x16xf32, #tpu.memory_space<vmem>>, vector<1x8x16xf32>
      %129 = vector.shape_cast %128 : vector<1x8x16xf32> to vector<8x16xf32>
      %cst_141 = arith.constant dense<0.000000e+00> : vector<8x8xf32>
      %130 = tpu.matmul %129, %115, %cst_141 {dimension_numbers = #tpu.dot_dimension_numbers<[1], [0], [0], [1], [0, 0, 1, 1], [], []>} : vector<8x16xf32>, vector<16x8xf32>, vector<8x8xf32> -> vector<8x8xf32>
      %c4_142 = arith.constant 4 : index
      %c0_143 = arith.constant 0 : index
      %c16_144 = arith.constant 16 : index
      %131 = vector.load %arg4[%c4_142, %c0_143, %c16_144] : memref<8x8x24xf32, #tpu.memory_space<vmem>>, vector<1x8x8xf32>
      %132 = vector.shape_cast %131 : vector<1x8x8xf32> to vector<8x8xf32>
      %133 = vector.shape_cast %130 : vector<8x8xf32> to vector<1x8x8xf32>
      tpu.vector_store %arg4[%c4_142, %c0_143, %c16_144], %133 {strides = array<i32>} : memref<8x8x24xf32, #tpu.memory_space<vmem>>, vector<1x8x8xf32>,
      %c5 = arith.constant 5 : index
      %c0_145 = arith.constant 0 : index
      %c0_146 = arith.constant 0 : index
      %134 = vector.load %arg3[%c5, %c0_145, %c0_146] : memref<8x16x8xf32, #tpu.memory_space<vmem>>, vector<1x16x8xf32>
      %135 = vector.shape_cast %134 : vector<1x16x8xf32> to vector<16x8xf32>
      %c0_147 = arith.constant 0 : index
      %c40 = arith.constant 40 : index
      %c0_148 = arith.constant 0 : index
      %136 = vector.load %arg5[%c0_147, %c40, %c0_148] : memref<3x64x16xf32, #tpu.memory_space<vmem>>, vector<1x8x16xf32>
      %137 = vector.shape_cast %136 : vector<1x8x16xf32> to vector<8x16xf32>
      %cst_149 = arith.constant dense<0.000000e+00> : vector<8x8xf32>
      %138 = tpu.matmul %137, %135, %cst_149 {dimension_numbers = #tpu.dot_dimension_numbers<[1], [0], [0], [1], [0, 0, 1, 1], [], []>} : vector<8x16xf32>, vector<16x8xf32>, vector<8x8xf32> -> vector<8x8xf32>
      %c5_150 = arith.constant 5 : index
      %c0_151 = arith.constant 0 : index
      %c0_152 = arith.constant 0 : index
      %139 = vector.load %arg4[%c5_150, %c0_151, %c0_152] : memref<8x8x24xf32, #tpu.memory_space<vmem>>, vector<1x8x8xf32>
      %140 = vector.shape_cast %139 : vector<1x8x8xf32> to vector<8x8xf32>
      %141 = vector.shape_cast %138 : vector<8x8xf32> to vector<1x8x8xf32>
      tpu.vector_store %arg4[%c5_150, %c0_151, %c0_152], %141 {strides = array<i32>} : memref<8x8x24xf32, #tpu.memory_space<vmem>>, vector<1x8x8xf32>,
      %c1_153 = arith.constant 1 : index
      %c40_154 = arith.constant 40 : index
      %c0_155 = arith.constant 0 : index
      %142 = vector.load %arg5[%c1_153, %c40_154, %c0_155] : memref<3x64x16xf32, #tpu.memory_space<vmem>>, vector<1x8x16xf32>
      %143 = vector.shape_cast %142 : vector<1x8x16xf32> to vector<8x16xf32>
      %cst_156 = arith.constant dense<0.000000e+00> : vector<8x8xf32>
      %144 = tpu.matmul %143, %135, %cst_156 {dimension_numbers = #tpu.dot_dimension_numbers<[1], [0], [0], [1], [0, 0, 1, 1], [], []>} : vector<8x16xf32>, vector<16x8xf32>, vector<8x8xf32> -> vector<8x8xf32>
      %c5_157 = arith.constant 5 : index
      %c0_158 = arith.constant 0 : index
      %c8_159 = arith.constant 8 : index
      %145 = vector.load %arg4[%c5_157, %c0_158, %c8_159] : memref<8x8x24xf32, #tpu.memory_space<vmem>>, vector<1x8x8xf32>
      %146 = vector.shape_cast %145 : vector<1x8x8xf32> to vector<8x8xf32>
      %147 = vector.shape_cast %144 : vector<8x8xf32> to vector<1x8x8xf32>
      tpu.vector_store %arg4[%c5_157, %c0_158, %c8_159], %147 {strides = array<i32>} : memref<8x8x24xf32, #tpu.memory_space<vmem>>, vector<1x8x8xf32>,
      %c2_160 = arith.constant 2 : index
      %c40_161 = arith.constant 40 : index
      %c0_162 = arith.constant 0 : index
      %148 = vector.load %arg5[%c2_160, %c40_161, %c0_162] : memref<3x64x16xf32, #tpu.memory_space<vmem>>, vector<1x8x16xf32>
      %149 = vector.shape_cast %148 : vector<1x8x16xf32> to vector<8x16xf32>
      %cst_163 = arith.constant dense<0.000000e+00> : vector<8x8xf32>
      %150 = tpu.matmul %149, %135, %cst_163 {dimension_numbers = #tpu.dot_dimension_numbers<[1], [0], [0], [1], [0, 0, 1, 1], [], []>} : vector<8x16xf32>, vector<16x8xf32>, vector<8x8xf32> -> vector<8x8xf32>
      %c5_164 = arith.constant 5 : index
      %c0_165 = arith.constant 0 : index
      %c16_166 = arith.constant 16 : index
      %151 = vector.load %arg4[%c5_164, %c0_165, %c16_166] : memref<8x8x24xf32, #tpu.memory_space<vmem>>, vector<1x8x8xf32>
      %152 = vector.shape_cast %151 : vector<1x8x8xf32> to vector<8x8xf32>
      %153 = vector.shape_cast %150 : vector<8x8xf32> to vector<1x8x8xf32>
      tpu.vector_store %arg4[%c5_164, %c0_165, %c16_166], %153 {strides = array<i32>} : memref<8x8x24xf32, #tpu.memory_space<vmem>>, vector<1x8x8xf32>,
      %c6 = arith.constant 6 : index
      %c0_167 = arith.constant 0 : index
      %c0_168 = arith.constant 0 : index
      %154 = vector.load %arg3[%c6, %c0_167, %c0_168] : memref<8x16x8xf32, #tpu.memory_space<vmem>>, vector<1x16x8xf32>
      %155 = vector.shape_cast %154 : vector<1x16x8xf32> to vector<16x8xf32>
      %c0_169 = arith.constant 0 : index
      %c48 = arith.constant 48 : index
      %c0_170 = arith.constant 0 : index
      %156 = vector.load %arg5[%c0_169, %c48, %c0_170] : memref<3x64x16xf32, #tpu.memory_space<vmem>>, vector<1x8x16xf32>
      %157 = vector.shape_cast %156 : vector<1x8x16xf32> to vector<8x16xf32>
      %cst_171 = arith.constant dense<0.000000e+00> : vector<8x8xf32>
      %158 = tpu.matmul %157, %155, %cst_171 {dimension_numbers = #tpu.dot_dimension_numbers<[1], [0], [0], [1], [0, 0, 1, 1], [], []>} : vector<8x16xf32>, vector<16x8xf32>, vector<8x8xf32> -> vector<8x8xf32>
      %c6_172 = arith.constant 6 : index
      %c0_173 = arith.constant 0 : index
      %c0_174 = arith.constant 0 : index
      %159 = vector.load %arg4[%c6_172, %c0_173, %c0_174] : memref<8x8x24xf32, #tpu.memory_space<vmem>>, vector<1x8x8xf32>
      %160 = vector.shape_cast %159 : vector<1x8x8xf32> to vector<8x8xf32>
      %161 = vector.shape_cast %158 : vector<8x8xf32> to vector<1x8x8xf32>
      tpu.vector_store %arg4[%c6_172, %c0_173, %c0_174], %161 {strides = array<i32>} : memref<8x8x24xf32, #tpu.memory_space<vmem>>, vector<1x8x8xf32>,
      %c1_175 = arith.constant 1 : index
      %c48_176 = arith.constant 48 : index
      %c0_177 = arith.constant 0 : index
      %162 = vector.load %arg5[%c1_175, %c48_176, %c0_177] : memref<3x64x16xf32, #tpu.memory_space<vmem>>, vector<1x8x16xf32>
      %163 = vector.shape_cast %162 : vector<1x8x16xf32> to vector<8x16xf32>
      %cst_178 = arith.constant dense<0.000000e+00> : vector<8x8xf32>
      %164 = tpu.matmul %163, %155, %cst_178 {dimension_numbers = #tpu.dot_dimension_numbers<[1], [0], [0], [1], [0, 0, 1, 1], [], []>} : vector<8x16xf32>, vector<16x8xf32>, vector<8x8xf32> -> vector<8x8xf32>
      %c6_179 = arith.constant 6 : index
      %c0_180 = arith.constant 0 : index
      %c8_181 = arith.constant 8 : index
      %165 = vector.load %arg4[%c6_179, %c0_180, %c8_181] : memref<8x8x24xf32, #tpu.memory_space<vmem>>, vector<1x8x8xf32>
      %166 = vector.shape_cast %165 : vector<1x8x8xf32> to vector<8x8xf32>
      %167 = vector.shape_cast %164 : vector<8x8xf32> to vector<1x8x8xf32>
      tpu.vector_store %arg4[%c6_179, %c0_180, %c8_181], %167 {strides = array<i32>} : memref<8x8x24xf32, #tpu.memory_space<vmem>>, vector<1x8x8xf32>,
      %c2_182 = arith.constant 2 : index
      %c48_183 = arith.constant 48 : index
      %c0_184 = arith.constant 0 : index
      %168 = vector.load %arg5[%c2_182, %c48_183, %c0_184] : memref<3x64x16xf32, #tpu.memory_space<vmem>>, vector<1x8x16xf32>
      %169 = vector.shape_cast %168 : vector<1x8x16xf32> to vector<8x16xf32>
      %cst_185 = arith.constant dense<0.000000e+00> : vector<8x8xf32>
      %170 = tpu.matmul %169, %155, %cst_185 {dimension_numbers = #tpu.dot_dimension_numbers<[1], [0], [0], [1], [0, 0, 1, 1], [], []>} : vector<8x16xf32>, vector<16x8xf32>, vector<8x8xf32> -> vector<8x8xf32>
      %c6_186 = arith.constant 6 : index
      %c0_187 = arith.constant 0 : index
      %c16_188 = arith.constant 16 : index
      %171 = vector.load %arg4[%c6_186, %c0_187, %c16_188] : memref<8x8x24xf32, #tpu.memory_space<vmem>>, vector<1x8x8xf32>
      %172 = vector.shape_cast %171 : vector<1x8x8xf32> to vector<8x8xf32>
      %173 = vector.shape_cast %170 : vector<8x8xf32> to vector<1x8x8xf32>
      tpu.vector_store %arg4[%c6_186, %c0_187, %c16_188], %173 {strides = array<i32>} : memref<8x8x24xf32, #tpu.memory_space<vmem>>, vector<1x8x8xf32>,
      %c7 = arith.constant 7 : index
      %c0_189 = arith.constant 0 : index
      %c0_190 = arith.constant 0 : index
      %174 = vector.load %arg3[%c7, %c0_189, %c0_190] : memref<8x16x8xf32, #tpu.memory_space<vmem>>, vector<1x16x8xf32>
      %175 = vector.shape_cast %174 : vector<1x16x8xf32> to vector<16x8xf32>
      %c0_191 = arith.constant 0 : index
      %c56 = arith.constant 56 : index
      %c0_192 = arith.constant 0 : index
      %176 = vector.load %arg5[%c0_191, %c56, %c0_192] : memref<3x64x16xf32, #tpu.memory_space<vmem>>, vector<1x8x16xf32>
      %177 = vector.shape_cast %176 : vector<1x8x16xf32> to vector<8x16xf32>
      %cst_193 = arith.constant dense<0.000000e+00> : vector<8x8xf32>
      %178 = tpu.matmul %177, %175, %cst_193 {dimension_numbers = #tpu.dot_dimension_numbers<[1], [0], [0], [1], [0, 0, 1, 1], [], []>} : vector<8x16xf32>, vector<16x8xf32>, vector<8x8xf32> -> vector<8x8xf32>
      %c7_194 = arith.constant 7 : index
      %c0_195 = arith.constant 0 : index
      %c0_196 = arith.constant 0 : index
      %179 = vector.load %arg4[%c7_194, %c0_195, %c0_196] : memref<8x8x24xf32, #tpu.memory_space<vmem>>, vector<1x8x8xf32>
      %180 = vector.shape_cast %179 : vector<1x8x8xf32> to vector<8x8xf32>
      %181 = vector.shape_cast %178 : vector<8x8xf32> to vector<1x8x8xf32>
      tpu.vector_store %arg4[%c7_194, %c0_195, %c0_196], %181 {strides = array<i32>} : memref<8x8x24xf32, #tpu.memory_space<vmem>>, vector<1x8x8xf32>,
      %c1_197 = arith.constant 1 : index
      %c56_198 = arith.constant 56 : index
      %c0_199 = arith.constant 0 : index
      %182 = vector.load %arg5[%c1_197, %c56_198, %c0_199] : memref<3x64x16xf32, #tpu.memory_space<vmem>>, vector<1x8x16xf32>
      %183 = vector.shape_cast %182 : vector<1x8x16xf32> to vector<8x16xf32>
      %cst_200 = arith.constant dense<0.000000e+00> : vector<8x8xf32>
      %184 = tpu.matmul %183, %175, %cst_200 {dimension_numbers = #tpu.dot_dimension_numbers<[1], [0], [0], [1], [0, 0, 1, 1], [], []>} : vector<8x16xf32>, vector<16x8xf32>, vector<8x8xf32> -> vector<8x8xf32>
      %c7_201 = arith.constant 7 : index
      %c0_202 = arith.constant 0 : index
      %c8_203 = arith.constant 8 : index
      %185 = vector.load %arg4[%c7_201, %c0_202, %c8_203] : memref<8x8x24xf32, #tpu.memory_space<vmem>>, vector<1x8x8xf32>
      %186 = vector.shape_cast %185 : vector<1x8x8xf32> to vector<8x8xf32>
      %187 = vector.shape_cast %184 : vector<8x8xf32> to vector<1x8x8xf32>
      tpu.vector_store %arg4[%c7_201, %c0_202, %c8_203], %187 {strides = array<i32>} : memref<8x8x24xf32, #tpu.memory_space<vmem>>, vector<1x8x8xf32>,
      %c2_204 = arith.constant 2 : index
      %c56_205 = arith.constant 56 : index
      %c0_206 = arith.constant 0 : index
      %188 = vector.load %arg5[%c2_204, %c56_205, %c0_206] : memref<3x64x16xf32, #tpu.memory_space<vmem>>, vector<1x8x16xf32>
      %189 = vector.shape_cast %188 : vector<1x8x16xf32> to vector<8x16xf32>
      %cst_207 = arith.constant dense<0.000000e+00> : vector<8x8xf32>
      %190 = tpu.matmul %189, %175, %cst_207 {dimension_numbers = #tpu.dot_dimension_numbers<[1], [0], [0], [1], [0, 0, 1, 1], [], []>} : vector<8x16xf32>, vector<16x8xf32>, vector<8x8xf32> -> vector<8x8xf32>
      %c7_208 = arith.constant 7 : index
      %c0_209 = arith.constant 0 : index
      %c16_210 = arith.constant 16 : index
      %191 = vector.load %arg4[%c7_208, %c0_209, %c16_210] : memref<8x8x24xf32, #tpu.memory_space<vmem>>, vector<1x8x8xf32>
      %192 = vector.shape_cast %191 : vector<1x8x8xf32> to vector<8x8xf32>
      %193 = vector.shape_cast %190 : vector<8x8xf32> to vector<1x8x8xf32>
      tpu.vector_store %arg4[%c7_208, %c0_209, %c16_210], %193 {strides = array<i32>} : memref<8x8x24xf32, #tpu.memory_space<vmem>>, vector<1x8x8xf32>,
    } else {
    }
    return
  }
  func.func @transform_0(%arg0: i32) -> (i32, i32, i32) {
    %c0_i32 = arith.constant 0 : i32
    %c0_i32_0 = arith.constant 0 : i32
    %c0_i32_1 = arith.constant 0 : i32
    return %c0_i32, %arg0, %c0_i32_0 : i32, i32, i32
  }
  func.func @transform_1(%arg0: i32) -> (i32, i32) {
    %c0_i32 = arith.constant 0 : i32
    %c0_i32_0 = arith.constant 0 : i32
    return %c0_i32, %arg0 : i32, i32
  }
  func.func @transform_2(%arg0: i32) -> (i32, i32, i32) {
    %c0_i32 = arith.constant 0 : i32
    %c0_i32_0 = arith.constant 0 : i32
    %c0_i32_1 = arith.constant 0 : i32
    %c0_i32_2 = arith.constant 0 : i32
    return %c0_i32, %c0_i32_0, %c0_i32_1 : i32, i32, i32
  }
  func.func @transform_3(%arg0: i32) -> (i32, i32, i32) {
    %c0_i32 = arith.constant 0 : i32
    %c0_i32_0 = arith.constant 0 : i32
    %c0_i32_1 = arith.constant 0 : i32
    %c0_i32_2 = arith.constant 0 : i32
    return %c0_i32, %c0_i32_0, %c0_i32_1 : i32, i32, i32
  }
}

</mosaic_0001>

<bundles_post_ra>
// kernel: tpu_custom_call.1
= control target key start
LH: loop header
LB: loop body
LE: loop exit
PB: predicated region body
PF: predicated region fallthrough
CT: control target
= control target key end

     0   :  { %vm19_vm0 = vcmask 130048   ;;  %v2889_v6 = vmov 0.0   ;;  %s3266_s0 = inlined_call_operand.vmem [shape: f32[3,16,16], index: 0, kind: input, shape index: {}]   ;;  %s3267_s1 = inlined_call_operand.vmem [shape: f32[64,16], index: 1, kind: input, shape index: {}]   ;;  %s3268_s2 = inlined_call_operand.vmem [shape: f32[8,16,8], index: 2, kind: input, shape index: {}]   ;;  %s3269_s3 = inlined_call_operand.hbm [shape: f32[8,8,24], index: 3, kind: output, shape index: {}]  }
   0x1   :  { %v60_v0 = vld [vmem:[%s3266_s0] sm:$0xff]  ;;  %v61_v1 = vld [vmem:[%s3266_s0 + $0x8] sm:$0xff]  ;;  %v2398_v2 = vld [vmem:[%s3266_s0 + $0x10] sm:$0xff]  ;;  %21 = vst.msk [vmem:[#allocation2 + $0x8] sm:$0xff] %vm19_vm0, %v2889_v6 }
   0x2   :  { %v2774_v3 = vpack.c.bf16 %v61_v1, %v60_v0  ;;  %v2399_v4 = vld [vmem:[%s3266_s0 + $0x18] sm:$0xff]  ;;  %v44_v5 = vld [vmem:[%s3267_s1] sm:$0xff]  ;;  %20 = vst.msk [vmem:[#allocation2] sm:$0xff] %vm19_vm0, %v2889_v6  ;;  %22 = vst.msk [vmem:[#allocation2 + $0x10] sm:$0xff] %vm19_vm0, %v2889_v6 }
   0x3   :  { %23 = vst.msk [vmem:[#allocation2 + $0x18] sm:$0xff] %vm19_vm0, %v2889_v6  ;;  %24 = vst.msk [vmem:[#allocation2 + $0x20] sm:$0xff] %vm19_vm0, %v2889_v6  ;;  %v2778_v7 = vpack.c.bf16 %v2399_v4, %v2398_v2  ;;  %2562 = vmatprep.mubr.msk.f32.mxu0 %vm19_vm0, %v44_v5  ;;  %2578 = vmatprep.mubr.msk.f32.mxu1 %vm19_vm0, %v44_v5  ;;  %v2408_v8 = vld [vmem:[%s3266_s0 + $0x20] sm:$0xff]  ;;  %v2409_v9 = vld [vmem:[%s3266_s0 + $0x28] sm:$0xff] }
   0x4   :  { %25 = vst.msk [vmem:[#allocation2 + $0x28] sm:$0xff] %vm19_vm0, %v2889_v6  ;;  %26 = vst.msk [vmem:[#allocation2 + $0x30] sm:$0xff] %vm19_vm0, %v2889_v6  ;;  %2775 = vmatprep.subr.bf16.mxu0 %v2774_v3  ;;  %v2782_v10 = vpack.c.bf16 %v2409_v9, %v2408_v8  ;;  %v45_v11 = vld [vmem:[%s3267_s1 + $0x8] sm:$0xff] }
   0x5   :  { %27 = vst.msk [vmem:[#allocation2 + $0x38] sm:$0xff] %vm19_vm0, %v2889_v6  ;;  %28 = vst.msk [vmem:[#allocation2 + $0x40] sm:$0xff] %vm19_vm0, %v2889_v6  ;;  %2777 = vmatpush3.bf16.msra.mxu0 %v2774_v3  ;;  %2779 = vmatprep.subr.bf16.mxu1 %v2778_v7 }
   0x6   :  { %29 = vst.msk [vmem:[#allocation2 + $0x48] sm:$0xff] %vm19_vm0, %v2889_v6  ;;  %30 = vst.msk [vmem:[#allocation2 + $0x50] sm:$0xff] %vm19_vm0, %v2889_v6 }
   0x7   :  { %31 = vst.msk [vmem:[#allocation2 + $0x58] sm:$0xff] %vm19_vm0, %v2889_v6  ;;  %32 = vst.msk [vmem:[#allocation2 + $0x60] sm:$0xff] %vm19_vm0, %v2889_v6 }
   0x8   :  { %33 = vst.msk [vmem:[#allocation2 + $0x68] sm:$0xff] %vm19_vm0, %v2889_v6  ;;  %34 = vst.msk [vmem:[#allocation2 + $0x70] sm:$0xff] %vm19_vm0, %v2889_v6 }
   0x9   :  { %35 = vst.msk [vmem:[#allocation2 + $0x78] sm:$0xff] %vm19_vm0, %v2889_v6  ;;  %36 = vst.msk [vmem:[#allocation2 + $0x80] sm:$0xff] %vm19_vm0, %v2889_v6 }
   0xa   :  { %37 = vst.msk [vmem:[#allocation2 + $0x88] sm:$0xff] %vm19_vm0, %v2889_v6  ;;  %38 = vst.msk [vmem:[#allocation2 + $0x90] sm:$0xff] %vm19_vm0, %v2889_v6 }
   0xb   :  { %39 = vst.msk [vmem:[#allocation2 + $0x98] sm:$0xff] %vm19_vm0, %v2889_v6  ;;  %40 = vst.msk [vmem:[#allocation2 + $0xa0] sm:$0xff] %vm19_vm0, %v2889_v6 }
   0xc   :  { %41 = vst.msk [vmem:[#allocation2 + $0xa8] sm:$0xff] %vm19_vm0, %v2889_v6  ;;  %42 = vst.msk [vmem:[#allocation2 + $0xb0] sm:$0xff] %vm19_vm0, %v2889_v6 }
   0xd   :  { %43 = vst.msk [vmem:[#allocation2 + $0xb8] sm:$0xff] %vm19_vm0, %v2889_v6 }
   0xe   :  { %8 = vsyncpa [#allocation4], 0  ;;  %2781 = vmatpush3.bf16.msra.mxu1 %v2778_v7  ;;  %2783 = vmatprep.subr.bf16.mxu0 %v2782_v10  ;;  %v46_v12 = vld [vmem:[%s3267_s1 + $0x10] sm:$0xff]  ;;  %v47_v13 = vld [vmem:[%s3267_s1 + $0x18] sm:$0xff]  ;;  %v2890_v23 = vmov 0.0|0.0   ;;  %vm2891_vm1 = vmmov 0  }
   0xf   :  { %2563 = vmatmul.mubr.msk.f32.vlgmr.msra.gmra.mrb[0].mxu0 %vm19_vm0, %v45_v11  ;;  %v48_v14 = vld [vmem:[%s3267_s1 + $0x20] sm:$0xff]  ;;  %v49_v15 = vld [vmem:[%s3267_s1 + $0x28] sm:$0xff]  ;;  %v50_v16 = vld [vmem:[%s3267_s1 + $0x30] sm:$0xff]  ;;  %2786 = vmatprep.subr.bf16.mxu1 %v2890_v23  ;;  %vm553_vm2 = vcmask 64512   ;;  %s2893_s14 = smov 16   ;;  %vm633_vm3 = vcmask 130112  }
  0x10   :  { %2785 = vmatpush3.bf16.msra.mxu0 %v2782_v10  ;;  %2565 = vmatprep.mubr.msk.f32.mxu0 %vm19_vm0, %v46_v12  ;;  %v51_v17 = vld [vmem:[%s3267_s1 + $0x38] sm:$0xff]  ;;  %v477_v18 = vld [vmem:[%s3268_s2] sm:$0xff]  ;;  %v478_v19 = vld [vmem:[%s3268_s2 + $0x8] sm:$0xff]  ;;  %vm713_vm4 = vcmask 195712   ;;  %s2894_s15 = smov [#allocation3]  }
  0x11   :  { %2579 = vmatmul.mubr.msk.f32.vlgmr.msra.gmra.mrb[0].mxu1 %vm19_vm0, %v45_v11  ;;  %v2421_v20 = vld [vmem:[%s3268_s2 + $0x10] sm:$0xff]  ;;  %v3039_v21 = vpack.c.bf16 %v478_v19, %v477_v18  ;;  %v2422_v22 = vld [vmem:[%s3268_s2 + $0x18] sm:$0xff]  ;;  %2798 = vmatprep.subr.bf16.mxu0 %v2890_v23  ;;  %v53_v25 = vld [vmem:[#allocation2 + $0x8] sm:$0xff]  ;;  %s2379_s16 = sshll.u32 %s2894_s15, 4  ;;  %s2380_s16 = int_to_ptr.vmem [resolvable:$true] %s2379_s16 }
  0x12   :  { %2581 = vmatprep.mubr.msk.f32.mxu1 %vm19_vm0, %v46_v12  ;;  %v3046_v24 = vpack.c.bf16 %v2422_v22, %v2421_v20  ;;  %v52_v26 = vld [vmem:[#allocation2] sm:$0xff]  ;;  %v210_v27 = vld [vmem:[#allocation2 + $0x48] sm:$0xff]  ;;  %v55_v35 = vld [vmem:[#allocation2 + $0x18] sm:$0xff]  ;;  %s2865_s17 = scalar_lea.vmem %s2380_s16, 1024  ;;  %p2870_p1 = scmp.lt.s32.totalorder %s2380_s16, %s2380_s16 }
  0x13   :  { %2566 = vmatmul.mubr.msk.f32.gmra.mrb[2].mxu0 %vm19_vm0, %v47_v13  ;;  %2788 = vmatpush3.bf16.msra.mxu1 %v3039_v21  ;;  %v209_v29 = vld [vmem:[#allocation2 + $0x40] sm:$0xff]  ;;  %v54_v37 = vld [vmem:[#allocation2 + $0x10] sm:$0xff]  ;;  %v212_v39 = vld [vmem:[#allocation2 + $0x58] sm:$0xff]  ;;  %p2866_p0 = scmp.ne.s32.totalorder %s2380_s16, %s2865_s17  ;;  %p2871_p2 = scmp.lt.s32.totalorder %s2865_s17, %s2865_s17 }
  0x14   :  { %2568 = vmatprep.mubr.msk.f32.mxu0 %vm19_vm0, %v48_v14  ;;  %2789 = vmatprep.subr.bf16.mxu1 %v2890_v23  ;;  %v211_v41 = vld [vmem:[#allocation2 + $0x50] sm:$0xff]  ;;  %v57_v46 = vld [vmem:[#allocation2 + $0x28] sm:$0xff]  ;;  %v2426_v47 = vld [vmem:[%s3268_s2 + $0x20] sm:$0xff] }
  0x15   :  { %2582 = vmatmul.mubr.msk.f32.gmra.mrb[2].mxu1 %vm19_vm0, %v47_v13  ;;  %v2427_v48 = vld [vmem:[%s3268_s2 + $0x28] sm:$0xff]  ;;  %v56_v51 = vld [vmem:[#allocation2 + $0x20] sm:$0xff]  ;;  %v59_v61 = vld [vmem:[#allocation2 + $0x38] sm:$0xff]  ;;  %p2872_p3 = por %p2871_p2, %p2870_p1 }
  0x16   :  { %2584 = vmatprep.mubr.msk.f32.mxu1 %vm19_vm0, %v48_v14  ;;  %v214_v53 = vld [vmem:[#allocation2 + $0x68] sm:$0xff]  ;;  %v213_v55 = vld [vmem:[#allocation2 + $0x60] sm:$0xff]  ;;  %v3069_v58 = vpack.c.bf16 %v2427_v48, %v2426_v47  ;;  %v58_v62 = vld [vmem:[#allocation2 + $0x30] sm:$0xff] }
  0x17   :  { %2569 = vmatmul.mubr.msk.f32.gmra.mrb[4].mxu0 %vm19_vm0, %v49_v15  ;;  %v216_v4 = vld [vmem:[#allocation2 + $0x78] sm:$0xff]  ;;  %v215_v7 = vld [vmem:[#allocation2 + $0x70] sm:$0xff]  ;;  %v2437_v47 = vld [vmem:[%s3268_s2 + $0x48] sm:$0xff]  ;;  %p2873_p4 = pnand %p2872_p3, %p2866_p0 }
  0x18   :  { %2571 = vmatprep.mubr.msk.f32.mxu0 %vm19_vm0, %v50_v16 }
  0x19   :  { %2585 = vmatmul.mubr.msk.f32.gmra.mrb[4].mxu1 %vm19_vm0, %v49_v15 }
  0x1a   :  { %2587 = vmatprep.mubr.msk.f32.mxu1 %vm19_vm0, %v50_v16 }
  0x1b   :  { %2572 = vmatmul.mubr.msk.f32.gmra.mrb[6].mxu0 %vm19_vm0, %v51_v17 }
  0x1c   :  { %2594 = vmatprep.mubr.msk.f32.mxu0 %vm19_vm0, %v44_v5 }
  0x1d   :  { %2588 = vmatmul.mubr.msk.f32.gmra.mrb[6].mxu1 %vm19_vm0, %v51_v17 }
  0x1e   :  { %2610 = vmatprep.mubr.msk.f32.mxu1 %vm2891_vm1, %v2889_v6 }
  0x1f   :  { %2595 = vmatmul.mubr.msk.f32.vlgmr.msra.gmra.mrb[8].mxu0 %vm19_vm0, %v45_v11 }
  0x20   :  { %2597 = vmatprep.mubr.msk.f32.mxu0 %vm19_vm0, %v46_v12  ;;  %2800 = vmatpush3.bf16.msra.mxu0 %v3046_v24  ;;  %v343_v12 = vld [vmem:[#allocation2 + $0x88] sm:$0xff] }
  0x21   :  { %2804 = vmatprep.subr.bf16.mxu0 %v2890_v23 }
  0x23   :  { %2598 = vmatmul.mubr.msk.f32.gmra.mrb[10].mxu0 %vm19_vm0, %v47_v13 }
  0x24   :  { %2600 = vmatprep.mubr.msk.f32.mxu0 %vm19_vm0, %v48_v14 }
  0x27   :  { %2601 = vmatmul.mubr.msk.f32.gmra.mrb[12].mxu0 %vm19_vm0, %v49_v15 }
  0x28   :  { %2603 = vmatprep.mubr.msk.f32.mxu0 %vm19_vm0, %v50_v16 }
  0x2b   :  { %2604 = vmatmul.mubr.msk.f32.gmra.mrb[14].mxu0 %vm19_vm0, %v51_v17  ;;  %v342_v17 = vld [vmem:[#allocation2 + $0x80] sm:$0xff] }
  0x2c   :  { %2638 = vmatprep.mubr.msk.f32.mxu0 %vm2891_vm1, %v2889_v6 }
  0xe2   :  { %v2564_v28 = vpop.f32.mrb[0].mxu0 }
  0xe3   :  { %v193_v30 = vadd.f32 %v2564_v28, %v53_v25  ;;  %v153_v31 = vpop.f32.mrb[1].mxu0 }
  0xe4   :  { %v2580_v32 = vpop.f32.mrb[0].mxu1  ;;  %v192_v33 = vadd.f32 %v153_v31, %v52_v26  ;;  %v345_v26 = vld [vmem:[#allocation2 + $0x98] sm:$0xff] }
  0xe5   :  { %v326_v34 = vadd.f32 %v2580_v32, %v210_v27  ;;  %v286_v36 = vpop.f32.mrb[1].mxu1  ;;  %201 = vst.msk [vmem:[#allocation2 + $0x8] sm:$0xff] %vm19_vm0, %v193_v30  ;;  %v344_v27 = vld [vmem:[#allocation2 + $0x90] sm:$0xff]  ;;  %v346_v32 = vld [vmem:[#allocation2 + $0xa0] sm:$0xff] }
  0xe6   :  { %v325_v38 = vadd.f32 %v286_v36, %v209_v29  ;;  %200 = vst.msk [vmem:[#allocation2] sm:$0xff] %vm19_vm0, %v192_v33  ;;  %v2567_v40 = vpop.f32.mrb[2].mxu0 }
  0xe7   :  { %334 = vst.msk [vmem:[#allocation2 + $0x48] sm:$0xff] %vm19_vm0, %v326_v34  ;;  %v195_v42 = vadd.f32 %v2567_v40, %v55_v35  ;;  %v163_v43 = vpop.f32.mrb[3].mxu0 }
  0xe8   :  { %333 = vst.msk [vmem:[#allocation2 + $0x40] sm:$0xff] %vm19_vm0, %v325_v38  ;;  %v2583_v44 = vpop.f32.mrb[2].mxu1  ;;  %v194_v45 = vadd.f32 %v163_v43, %v54_v37  ;;  %v2431_v37 = vld [vmem:[%s3268_s2 + $0x30] sm:$0xff]  ;;  %v2432_v38 = vld [vmem:[%s3268_s2 + $0x38] sm:$0xff] }
  0xe9   :  { %v328_v49 = vadd.f32 %v2583_v44, %v212_v39  ;;  %v296_v50 = vpop.f32.mrb[3].mxu1  ;;  %203 = vst.msk [vmem:[#allocation2 + $0x18] sm:$0xff] %vm19_vm0, %v195_v42  ;;  %v349_v39 = vld [vmem:[#allocation2 + $0xb8] sm:$0xff]  ;;  %v2814_v43 = vpack.c.bf16 %v2432_v38, %v2431_v37 }
  0xea   :  { %v327_v52 = vadd.f32 %v296_v50, %v211_v41  ;;  %202 = vst.msk [vmem:[#allocation2 + $0x10] sm:$0xff] %vm19_vm0, %v194_v45  ;;  %v2570_v54 = vpop.f32.mrb[4].mxu0  ;;  %v348_v41 = vld [vmem:[#allocation2 + $0xb0] sm:$0xff] }
  0xeb   :  { %336 = vst.msk [vmem:[#allocation2 + $0x58] sm:$0xff] %vm19_vm0, %v328_v49  ;;  %v197_v56 = vadd.f32 %v2570_v54, %v57_v46  ;;  %v173_v57 = vpop.f32.mrb[5].mxu0  ;;  %v2436_v46 = vld [vmem:[%s3268_s2 + $0x40] sm:$0xff]  ;;  %v2441_v54 = vld [vmem:[%s3268_s2 + $0x50] sm:$0xff] }
  0xec   :  { %335 = vst.msk [vmem:[#allocation2 + $0x50] sm:$0xff] %vm19_vm0, %v327_v52  ;;  %v2586_v59 = vpop.f32.mrb[4].mxu1  ;;  %v196_v60 = vadd.f32 %v173_v57, %v56_v51  ;;  %v718_v49 = vld [vmem:[#allocation2 + $0x8] sm:$0xff]  ;;  %v2823_v52 = vpack.c.bf16 %v2437_v47, %v2436_v46 }
  0xed   :  { %v330_v63 = vadd.f32 %v2586_v59, %v214_v53  ;;  %v306_v0 = vpop.f32.mrb[5].mxu1  ;;  %205 = vst.msk [vmem:[#allocation2 + $0x28] sm:$0xff] %vm19_vm0, %v197_v56  ;;  %v479_v1 = vld [vmem:[#allocation2] sm:$0xff] }
  0xee   :  { %v794_v2 = vld [vmem:[#allocation2 + $0x48] sm:$0xff]  ;;  %v329_v3 = vadd.f32 %v306_v0, %v213_v55  ;;  %204 = vst.msk [vmem:[#allocation2 + $0x20] sm:$0xff] %vm19_vm0, %v196_v60  ;;  %v2573_v5 = vpop.f32.mrb[6].mxu0  ;;  %2611 = vmatmul.mubr.msk.f32.vlgmr.msra.gmra.mrb[8].mxu1 %vm19_vm0, %v479_v1  ;;  %v2442_v55 = vld [vmem:[%s3268_s2 + $0x58] sm:$0xff]  ;;  %v2446_v59 = vld [vmem:[%s3268_s2 + $0x60] sm:$0xff] }
  0xef   :  { %2639 = vmatmul.mubr.msk.f32.vlgmr.msra.gmra.mrb[16].mxu0 %vm19_vm0, %v794_v2  ;;  %338 = vst.msk [vmem:[#allocation2 + $0x68] sm:$0xff] %vm19_vm0, %v330_v63  ;;  %v199_v8 = vadd.f32 %v2573_v5, %v59_v61  ;;  %v183_v9 = vpop.f32.mrb[7].mxu0  ;;  %2791 = vmatpush3.bf16.msra.mxu1 %v3039_v21  ;;  %v555_v13 = vld [vmem:[#allocation2 + $0x40] sm:$0xff]  ;;  %v2447_v60 = vld [vmem:[%s3268_s2 + $0x68] sm:$0xff]  ;;  %v2451_v2 = vld [vmem:[%s3268_s2 + $0x70] sm:$0xff] }
  0xf0   :  { %2806 = vmatpush3.bf16.msra.mxu0 %v3069_v58  ;;  %2652 = vmatprep.mubr.msk.f32.mxu0 %vm2891_vm1, %v2889_v6  ;;  %337 = vst.msk [vmem:[#allocation2 + $0x60] sm:$0xff] %vm19_vm0, %v329_v3  ;;  %v2589_v10 = vpop.f32.mrb[6].mxu1  ;;  %v198_v11 = vadd.f32 %v183_v9, %v58_v62  ;;  %v1192_v61 = vld [vmem:[#allocation2 + $0x18] sm:$0xff]  ;;  %v2841_v63 = vpack.c.bf16 %v2447_v60, %v2446_v59 }
  0xf1   :  { %2617 = vmatprep.mubr.msk.f32.mxu1 %vm2891_vm1, %v2889_v6  ;;  %v332_v14 = vadd.f32 %v2589_v10, %v216_v4  ;;  %v316_v15 = vpop.f32.mrb[7].mxu1  ;;  %207 = vst.msk [vmem:[#allocation2 + $0x38] sm:$0xff] %vm19_vm0, %v199_v8  ;;  %v955_v16 = vld [vmem:[#allocation2 + $0x10] sm:$0xff]  ;;  %2792 = vmatprep.subr.bf16.mxu1 %v2890_v23  ;;  %v2452_v3 = vld [vmem:[%s3268_s2 + $0x78] sm:$0xff]  ;;  %s2892_s2 = smov 8  }
  0xf2   :  { %2810 = vmatprep.subr.bf16.mxu0 %v2890_v23  ;;  %v331_v18 = vadd.f32 %v316_v15, %v215_v7  ;;  %206 = vst.msk [vmem:[#allocation2 + $0x30] sm:$0xff] %vm19_vm0, %v198_v11  ;;  %v2596_v19 = vpop.f32.mrb[8].mxu0  ;;  %2618 = vmatmul.mubr.msk.f32.vlgmr.msra.gmra.mrb[10].mxu1 %vm19_vm0, %v555_v13  ;;  %v1268_v51 = vld [vmem:[#allocation2 + $0x58] sm:$0xff]  ;;  %v2850_v7 = vpack.c.bf16 %v2452_v3, %v2451_v2 }
  0xf3   :  { %2653 = vmatmul.mubr.msk.f32.vlgmr.msra.gmra.mrb[18].mxu0 %vm19_vm0, %v955_v16  ;;  %340 = vst.msk [vmem:[#allocation2 + $0x78] sm:$0xff] %vm19_vm0, %v332_v14  ;;  %v459_v20 = vadd.f32 %v2596_v19, %v343_v12  ;;  %v419_v22 = vpop.f32.mrb[9].mxu0  ;;  %2794 = vmatpush3.bf16.msra.mxu1 %v3039_v21  ;;  %v347_v21 = vld [vmem:[#allocation2 + $0xa8] sm:$0xff] }
  0xf4   :  { %2812 = vmatpush3.bf16.msra.mxu0 %v3069_v58  ;;  %339 = vst.msk [vmem:[#allocation2 + $0x70] sm:$0xff] %vm19_vm0, %v331_v18  ;;  %v458_v25 = vadd.f32 %v419_v22, %v342_v17  ;;  %2624 = vmatprep.mubr.msk.f32.mxu1 %vm2891_vm1, %v2889_v6  ;;  %v1666_v8 = vld [vmem:[#allocation2 + $0x28] sm:$0xff] }
  0xf5   :  { %467 = vst.msk [vmem:[#allocation2 + $0x88] sm:$0xff] %vm19_vm0, %v459_v20  ;;  %2795 = vmatprep.subr.bf16.mxu1 %v2890_v23  ;;  %2666 = vmatprep.mubr.msk.f32.mxu0 %vm2891_vm1, %v2889_v6  ;;  %v1429_v56 = vld [vmem:[#allocation2 + $0x20] sm:$0xff] }
  0xf6   :  { %466 = vst.msk [vmem:[#allocation2 + $0x80] sm:$0xff] %vm19_vm0, %v458_v25  ;;  %v2599_v28 = vpop.f32.mrb[10].mxu0  ;;  %2816 = vmatprep.subr.bf16.mxu0 %v2890_v23  ;;  %v1742_v62 = vld [vmem:[#allocation2 + $0x68] sm:$0xff] }
  0xf7   :  { %v461_v29 = vadd.f32 %v2599_v28, %v345_v26  ;;  %v429_v30 = vpop.f32.mrb[11].mxu0  ;;  %v1505_v1 = vld [vmem:[#allocation2 + $0x60] sm:$0xff] }
  0xf8   :  { %v460_v31 = vadd.f32 %v429_v30, %v344_v27  ;;  %v2140_v12 = vld [vmem:[#allocation2 + $0x38] sm:$0xff] }
  0xf9   :  { %469 = vst.msk [vmem:[#allocation2 + $0x98] sm:$0xff] %vm19_vm0, %v461_v29  ;;  %v1903_v4 = vld [vmem:[#allocation2 + $0x30] sm:$0xff] }
  0xfa   :  { %468 = vst.msk [vmem:[#allocation2 + $0x90] sm:$0xff] %vm19_vm0, %v460_v31  ;;  %v2602_v33 = vpop.f32.mrb[12].mxu0  ;;  %v2216_v9 = vld [vmem:[#allocation2 + $0x78] sm:$0xff] }
  0xfb   :  { %v463_v34 = vadd.f32 %v2602_v33, %v347_v21  ;;  %v439_v35 = vpop.f32.mrb[13].mxu0  ;;  %v1979_v11 = vld [vmem:[#allocation2 + $0x70] sm:$0xff] }
  0xfc   :  { %v462_v36 = vadd.f32 %v439_v35, %v346_v32  ;;  %v873_v53 = vld [vmem:[#allocation2 + $0x88] sm:$0xff] }
  0xfd   :  { %v635_v40 = vld [vmem:[#allocation2 + $0x80] sm:$0xff]  ;;  %471 = vst.msk [vmem:[#allocation2 + $0xa8] sm:$0xff] %vm19_vm0, %v463_v34 }
  0xfe   :  { %2625 = vmatmul.mubr.msk.f32.vlgmr.msra.gmra.mrb[12].mxu1 %vm19_vm0, %v635_v40  ;;  %470 = vst.msk [vmem:[#allocation2 + $0xa0] sm:$0xff] %vm19_vm0, %v462_v36  ;;  %v2605_v42 = vpop.f32.mrb[14].mxu0 }
  0xff   :  { %2797 = vmatpush3.bf16.msra.mxu1 %v3046_v24  ;;  %2631 = vmatprep.mubr.msk.f32.mxu1 %vm2891_vm1, %v2889_v6  ;;  %v465_v44 = vadd.f32 %v2605_v42, %v349_v39  ;;  %v449_v45 = vpop.f32.mrb[15].mxu0 }
 0x100   :  { %2801 = vmatprep.subr.bf16.mxu1 %v2890_v23  ;;  %v464_v48 = vadd.f32 %v449_v45, %v348_v41  ;;  %v1347_v0 = vld [vmem:[#allocation2 + $0x98] sm:$0xff] }
 0x101   :  { %v1110_v50 = vld [vmem:[#allocation2 + $0x90] sm:$0xff]  ;;  %473 = vst.msk [vmem:[#allocation2 + $0xb8] sm:$0xff] %vm19_vm0, %v465_v44 }
 0x102   :  { %2632 = vmatmul.mubr.msk.f32.vlgmr.msra.gmra.mrb[14].mxu1 %vm19_vm0, %v718_v49  ;;  %2667 = vmatmul.mubr.msk.f32.vlgmr.msra.gmra.mrb[20].mxu0 %vm19_vm0, %v1110_v50  ;;  %472 = vst.msk [vmem:[#allocation2 + $0xb0] sm:$0xff] %vm19_vm0, %v464_v48 }
 0x103   :  { %2803 = vmatpush3.bf16.msra.mxu1 %v3046_v24  ;;  %2818 = vmatpush3.bf16.msra.mxu0 %v2814_v43  ;;  %v1031_v24 = vld [vmem:[#allocation2 + $0x50] sm:$0xff] }
 0x104   :  { %2645 = vmatprep.mubr.msk.f32.mxu1 %vm2891_vm1, %v2889_v6  ;;  %2680 = vmatprep.mubr.msk.f32.mxu0 %vm2891_vm1, %v2889_v6  ;;  %v1821_v10 = vld [vmem:[#allocation2 + $0xa8] sm:$0xff] }
 0x105   :  { %2807 = vmatprep.subr.bf16.mxu1 %v2890_v23  ;;  %2822 = vmatprep.subr.bf16.mxu0 %v2890_v23  ;;  %v1584_v57 = vld [vmem:[#allocation2 + $0xa0] sm:$0xff] }
 0x106   :  { %2646 = vmatmul.mubr.msk.f32.vlgmr.msra.gmra.mrb[16].mxu1 %vm19_vm0, %v873_v53  ;;  %2681 = vmatmul.mubr.msk.f32.vlgmr.msra.gmra.mrb[22].mxu0 %vm19_vm0, %v1268_v51 }
 0x107   :  { %2809 = vmatpush3.bf16.msra.mxu1 %v3069_v58  ;;  %2824 = vmatpush3.bf16.msra.mxu0 %v2823_v52  ;;  %v2832_v58 = vpack.c.bf16 %v2442_v55, %v2441_v54 }
 0x108   :  { %2659 = vmatprep.mubr.msk.f32.mxu1 %vm2891_vm1, %v2889_v6  ;;  %2694 = vmatprep.mubr.msk.f32.mxu0 %vm2891_vm1, %v2889_v6  ;;  %v2295_v13 = vld [vmem:[#allocation2 + $0xb8] sm:$0xff] }
 0x109   :  { %2813 = vmatprep.subr.bf16.mxu1 %v2890_v23  ;;  %2828 = vmatprep.subr.bf16.mxu0 %v2890_v23  ;;  %v2058_v5 = vld [vmem:[#allocation2 + $0xb0] sm:$0xff] }
 0x10a   :  { %2660 = vmatmul.mubr.msk.f32.vlgmr.msra.gmra.mrb[18].mxu1 %vm19_vm0, %v1031_v24  ;;  %2695 = vmatmul.mubr.msk.f32.vlgmr.msra.gmra.mrb[24].mxu0 %vm19_vm0, %v1429_v56 }
 0x10b   :  { %2815 = vmatpush3.bf16.msra.mxu1 %v2814_v43  ;;  %2830 = vmatpush3.bf16.msra.mxu0 %v2823_v52 }
 0x10c   :  { %2673 = vmatprep.mubr.msk.f32.mxu1 %vm2891_vm1, %v2889_v6  ;;  %2708 = vmatprep.mubr.msk.f32.mxu0 %vm2891_vm1, %v2889_v6 }
 0x10d   :  { %2819 = vmatprep.subr.bf16.mxu1 %v2890_v23  ;;  %2834 = vmatprep.subr.bf16.mxu0 %v2890_v23 }
 0x10e   :  { %2674 = vmatmul.mubr.msk.f32.vlgmr.msra.gmra.mrb[20].mxu1 %vm19_vm0, %v1192_v61  ;;  %2709 = vmatmul.mubr.msk.f32.vlgmr.msra.gmra.mrb[26].mxu0 %vm19_vm0, %v1584_v57 }
 0x10f   :  { %2821 = vmatpush3.bf16.msra.mxu1 %v2814_v43  ;;  %2836 = vmatpush3.bf16.msra.mxu0 %v2832_v58 }
 0x110   :  { %2687 = vmatprep.mubr.msk.f32.mxu1 %vm2891_vm1, %v2889_v6  ;;  %2722 = vmatprep.mubr.msk.f32.mxu0 %vm2891_vm1, %v2889_v6 }
 0x111   :  { %2825 = vmatprep.subr.bf16.mxu1 %v2890_v23  ;;  %2840 = vmatprep.subr.bf16.mxu0 %v2890_v23 }
 0x112   :  { %2688 = vmatmul.mubr.msk.f32.vlgmr.msra.gmra.mrb[22].mxu1 %vm19_vm0, %v1347_v0  ;;  %2723 = vmatmul.mubr.msk.f32.vlgmr.msra.gmra.mrb[28].mxu0 %vm19_vm0, %v1742_v62 }
 0x113   :  { %2827 = vmatpush3.bf16.msra.mxu1 %v2823_v52  ;;  %2842 = vmatpush3.bf16.msra.mxu0 %v2841_v63 }
 0x114   :  { %2701 = vmatprep.mubr.msk.f32.mxu1 %vm2891_vm1, %v2889_v6  ;;  %2736 = vmatprep.mubr.msk.f32.mxu0 %vm2891_vm1, %v2889_v6 }
 0x115   :  { %2831 = vmatprep.subr.bf16.mxu1 %v2890_v23  ;;  %2846 = vmatprep.subr.bf16.mxu0 %v2890_v23 }
 0x116   :  { %2702 = vmatmul.mubr.msk.f32.vlgmr.msra.gmra.mrb[24].mxu1 %vm19_vm0, %v1505_v1  ;;  %2737 = vmatmul.mubr.msk.f32.vlgmr.msra.gmra.mrb[30].mxu0 %vm19_vm0, %v1903_v4 }
 0x117   :  { %2833 = vmatpush3.bf16.msra.mxu1 %v2832_v58  ;;  %2848 = vmatpush3.bf16.msra.mxu0 %v2841_v63 }
 0x118   :  { %2715 = vmatprep.mubr.msk.f32.mxu1 %vm2891_vm1, %v2889_v6  ;;  %2750 = vmatprep.mubr.msk.f32.mxu0 %vm2891_vm1, %v2889_v6 }
 0x119   :  { %2837 = vmatprep.subr.bf16.mxu1 %v2890_v23  ;;  %2852 = vmatprep.subr.bf16.mxu0 %v2890_v23 }
 0x11a   :  { %2716 = vmatmul.mubr.msk.f32.vlgmr.msra.gmra.mrb[26].mxu1 %vm19_vm0, %v1666_v8  ;;  %2751 = vmatmul.mubr.msk.f32.vlgmr.msra.gmra.mrb[32].mxu0 %vm19_vm0, %v2058_v5 }
 0x11b   :  { %2839 = vmatpush3.bf16.msra.mxu1 %v2832_v58  ;;  %2854 = vmatpush3.bf16.msra.mxu0 %v2850_v7 }
 0x11c   :  { %2729 = vmatprep.mubr.msk.f32.mxu1 %vm2891_vm1, %v2889_v6  ;;  %2764 = vmatprep.mubr.msk.f32.mxu0 %vm2891_vm1, %v2889_v6 }
 0x11d   :  { %2843 = vmatprep.subr.bf16.mxu1 %v2890_v23 }
 0x11e   :  { %2730 = vmatmul.mubr.msk.f32.vlgmr.msra.gmra.mrb[28].mxu1 %vm19_vm0, %v1821_v10  ;;  %2765 = vmatmul.mubr.msk.f32.vlgmr.msra.gmra.mrb[34].mxu0 %vm19_vm0, %v2216_v9 }
 0x11f   :  { %2845 = vmatpush3.bf16.msra.mxu1 %v2841_v63  ;;  %2743 = vmatprep.mubr.msk.f32.mxu1 %vm2891_vm1, %v2889_v6 }
 0x120   :  { %2849 = vmatprep.subr.bf16.mxu1 %v2890_v23 }
 0x122   :  { %2744 = vmatmul.mubr.msk.f32.vlgmr.msra.gmra.mrb[30].mxu1 %vm19_vm0, %v1979_v11 }
 0x123   :  { %2851 = vmatpush3.bf16.msra.mxu1 %v2850_v7  ;;  %2757 = vmatprep.mubr.msk.f32.mxu1 %vm2891_vm1, %v2889_v6 }
 0x124   :  { %2855 = vmatprep.subr.bf16.mxu1 %v2890_v23 }
 0x126   :  { %2758 = vmatmul.mubr.msk.f32.vlgmr.msra.gmra.mrb[32].mxu1 %vm19_vm0, %v2140_v12 }
 0x127   :  { %2857 = vmatpush3.bf16.msra.mxu1 %v2850_v7  ;;  %2771 = vmatprep.mubr.msk.f32.mxu1 %vm2891_vm1, %v2889_v6 }
 0x12a   :  { %2772 = vmatmul.mubr.msk.f32.vlgmr.msra.gmra.mrb[34].mxu1 %vm19_vm0, %v2295_v13 }
 0x1c1   :  { %v549_v14 = vpop.f32.mrb[8].mxu1 }
 0x1c2   :  { %v864_v15 = vpop.f32.mrb[16].mxu0  ;;  %554 = vst.msk [vmem:[#allocation3] sm:$0xff] %vm553_vm2, %v549_v14  ;;  %v2612_v16 = vpop.f32.mrb[9].mxu1 }
 0x1c3   :  { %v2640_v17 = vpop.f32.mrb[17].mxu0  ;;  %869 = vrot.lane.b32.xlu0 %v864_v15, %s2892_s2 }
 0x1c5   :  { %v625_v19 = vpop.f32.mrb[10].mxu1 }
 0x1c6   :  { %v1025_v23 = vpop.f32.mrb[18].mxu0  ;;  %v2619_v20 = vpop.f32.mrb[11].mxu1 }
 0x1c7   :  { %1030 = vst.msk [vmem:[#allocation3 + $0x10] sm:$0xff] %vm553_vm2, %v1025_v23  ;;  %v2654_v18 = vpop.f32.mrb[19].mxu0  ;;  %630 = vrot.lane.b32.xlu0 %v625_v19, %s2892_s2 }
 0x1d1   :  { %v705_v6 = vpop.f32.mrb[12].mxu1 }
 0x1d2   :  { %710 = vrot.lane.b32.xlu0 %v705_v6, %s2893_s14  ;;  %v2626_v22 = vpop.f32.mrb[13].mxu1 }
 0x1d5   :  { %v788_v25 = vpop.f32.mrb[14].mxu1  ;;  %v1180_v26 = vpop.f32.mrb[20].mxu0 }
 0x1d6   :  { %793 = vst.msk [vmem:[#allocation3 + $0x8] sm:$0xff] %vm553_vm2, %v788_v25  ;;  %v2633_v27 = vpop.f32.mrb[15].mxu1  ;;  %v2668_v28 = vpop.f32.mrb[21].mxu0  ;;  %1185 = vrot.lane.b32.xlu0 %v1180_v26, %s2893_s14 }
 0x1d9   :  { %v943_v29 = vpop.f32.mrb[16].mxu1  ;;  %v1338_v30 = vpop.f32.mrb[22].mxu0 }
 0x1da   :  { %1343 = vrot.lane.b32.xlu1 %v1338_v30, %s2892_s2  ;;  %v2647_v31 = vpop.f32.mrb[17].mxu1  ;;  %v2682_v21 = vpop.f32.mrb[23].mxu0 }
 0x1dd   :  { %v1101_v32 = vpop.f32.mrb[18].mxu1  ;;  %v1499_v33 = vpop.f32.mrb[24].mxu0 }
 0x1de   :  { %1504 = vst.msk [vmem:[#allocation3 + $0x20] sm:$0xff] %vm553_vm2, %v1499_v33  ;;  %v2696_v34 = vpop.f32.mrb[25].mxu0  ;;  %948 = vrot.lane.b32.xlu1 %v943_v29, %s2893_s14  ;;  %v2661_v35 = vpop.f32.mrb[19].mxu1 }
 0x1e1   :  { %v1262_v36 = vpop.f32.mrb[20].mxu1  ;;  %v1654_v37 = vpop.f32.mrb[26].mxu0 }
 0x1e2   :  { %1267 = vst.msk [vmem:[#allocation3 + $0x18] sm:$0xff] %vm553_vm2, %v1262_v36  ;;  %1106 = vrot.lane.b32.xlu1 %v1101_v32, %s2892_s2  ;;  %v2675_v38 = vpop.f32.mrb[21].mxu1  ;;  %v2710_v39 = vpop.f32.mrb[27].mxu0  ;;  %1659 = vrot.lane.b32.xlu0 %v1654_v37, %s2893_s14 }
 0x1e5   :  { %v1417_v40 = vpop.f32.mrb[22].mxu1  ;;  %v1812_v41 = vpop.f32.mrb[28].mxu0 }
 0x1e6   :  { %1817 = vrot.lane.b32.xlu1 %v1812_v41, %s2892_s2  ;;  %v2689_v42 = vpop.f32.mrb[23].mxu1  ;;  %v2724_v43 = vpop.f32.mrb[29].mxu0 }
 0x1e9   :  { %v1575_v44 = vpop.f32.mrb[24].mxu1  ;;  %v1973_v45 = vpop.f32.mrb[30].mxu0 }
 0x1ea   :  { %1978 = vst.msk [vmem:[#allocation3 + $0x30] sm:$0xff] %vm553_vm2, %v1973_v45  ;;  %v2738_v46 = vpop.f32.mrb[31].mxu0  ;;  %1422 = vrot.lane.b32.xlu1 %v1417_v40, %s2893_s14  ;;  %1580 = vrot.lane.b32.xlu0 %v1575_v44, %s2892_s2  ;;  %v2703_v47 = vpop.f32.mrb[25].mxu1 }
 0x1ed   :  { %v1736_v48 = vpop.f32.mrb[26].mxu1  ;;  %v2128_v49 = vpop.f32.mrb[32].mxu0 }
 0x1ee   :  { %1741 = vst.msk [vmem:[#allocation3 + $0x28] sm:$0xff] %vm553_vm2, %v1736_v48  ;;  %v2717_v50 = vpop.f32.mrb[27].mxu1  ;;  %v2752_v51 = vpop.f32.mrb[33].mxu0 }
 0x1f1   :  { %v1891_v52 = vpop.f32.mrb[28].mxu1  ;;  %v2286_v53 = vpop.f32.mrb[34].mxu0 }
 0x1f2   :  { %2291 = vrot.lane.b32.xlu1 %v2286_v53, %s2892_s2  ;;  %v2731_v24 = vpop.f32.mrb[29].mxu1  ;;  %v2766_v54 = vpop.f32.mrb[35].mxu0 }
 0x1f5   :  { %v2049_v55 = vpop.f32.mrb[30].mxu1 }
 0x1f6   :  { %1896 = vrot.lane.b32.xlu1 %v1891_v52, %s2893_s14  ;;  %2054 = vrot.lane.b32.xlu0 %v2049_v55, %s2892_s2  ;;  %v2745_v56 = vpop.f32.mrb[31].mxu1 }
 0x1f9   :  { %v2210_v57 = vpop.f32.mrb[32].mxu1 }
 0x1fa   :  { %2215 = vst.msk [vmem:[#allocation3 + $0x38] sm:$0xff] %vm553_vm2, %v2210_v57  ;;  %2133 = vrot.lane.b32.xlu0 %v2128_v49, %s2893_s14  ;;  %v2759_v58 = vpop.f32.mrb[33].mxu1 }
 0x1fd   :  { %v2365_v59 = vpop.f32.mrb[34].mxu1 }
 0x1fe   :  { %2370 = vrot.lane.b32.xlu1 %v2365_v59, %s2893_s14  ;;  %v2773_v60 = vpop.f32.mrb[35].mxu1 }
 0x235   :  { %v870_v61 = vpop.permute.xlu0 %869 }
 0x236   :  { %872 = vst.msk [vmem:[#allocation3 + $0x8] sm:$0xff] %vm633_vm3, %v870_v61 }
 0x239   :  { %v631_v62 = vpop.permute.xlu0 %630 }
 0x23a   :  { %634 = vst.msk [vmem:[#allocation3] sm:$0xff] %vm633_vm3, %v631_v62 }
 0x244   :  { %v711_v63 = vpop.permute.xlu0 %710 }
 0x245   :  { %714 = vst.msk [vmem:[#allocation3] sm:$0xff] %vm713_vm4, %v711_v63 }
 0x248   :  { %v1186_v2 = vpop.permute.xlu0 %1185 }
 0x24c   :  { %v1344_v0 = vpop.permute.xlu1 %1343 }
 0x24d   :  { %1346 = vst.msk [vmem:[#allocation3 + $0x18] sm:$0xff] %vm633_vm3, %v1344_v0 }
 0x250   :  { %v949_v1 = vpop.permute.xlu1 %948 }
 0x251   :  { %951 = vst.msk [vmem:[#allocation3 + $0x8] sm:$0xff] %vm713_vm4, %v949_v1 }
 0x254   :  { %v1107_v3 = vpop.permute.xlu1 %1106  ;;  %v1660_v4 = vpop.permute.xlu0 %1659 }
 0x255   :  { %1109 = vst.msk [vmem:[#allocation3 + $0x10] sm:$0xff] %vm633_vm3, %v1107_v3 }
 0x256   :  { %1188 = vst.msk [vmem:[#allocation3 + $0x10] sm:$0xff] %vm713_vm4, %v1186_v2 }
 0x258   :  { %v1818_v5 = vpop.permute.xlu1 %1817 }
 0x259   :  { %1820 = vst.msk [vmem:[#allocation3 + $0x28] sm:$0xff] %vm633_vm3, %v1818_v5 }
 0x25c   :  { %v1423_v7 = vpop.permute.xlu1 %1422  ;;  %v1581_v8 = vpop.permute.xlu0 %1580 }
 0x25d   :  { %1425 = vst.msk [vmem:[#allocation3 + $0x18] sm:$0xff] %vm713_vm4, %v1423_v7 }
 0x25e   :  { %1583 = vst.msk [vmem:[#allocation3 + $0x20] sm:$0xff] %vm633_vm3, %v1581_v8 }
 0x25f   :  { %1662 = vst.msk [vmem:[#allocation3 + $0x20] sm:$0xff] %vm713_vm4, %v1660_v4 }
 0x264   :  { %v2292_v9 = vpop.permute.xlu1 %2291 }
 0x265   :  { %2294 = vst.msk [vmem:[#allocation3 + $0x38] sm:$0xff] %vm633_vm3, %v2292_v9 }
 0x268   :  { %v1897_v10 = vpop.permute.xlu1 %1896  ;;  %v2055_v11 = vpop.permute.xlu0 %2054 }
 0x269   :  { %1899 = vst.msk [vmem:[#allocation3 + $0x28] sm:$0xff] %vm713_vm4, %v1897_v10 }
 0x26a   :  { %2057 = vst.msk [vmem:[#allocation3 + $0x30] sm:$0xff] %vm633_vm3, %v2055_v11 }
 0x26c   :  { %v2134_v12 = vpop.permute.xlu0 %2133 }
 0x26d   :  { %2136 = vst.msk [vmem:[#allocation3 + $0x30] sm:$0xff] %vm713_vm4, %v2134_v12 }
 0x270   :  { %v2371_v13 = vpop.permute.xlu1 %2370 }
 0x271   :  { %2373 = vst.msk [vmem:[#allocation3 + $0x38] sm:$0xff] %vm713_vm4, %v2371_v13 }
 0x272   :  { %2876 = shalt.err (!%p2873_p4)
}
 0x273   :  { %s2877_s20 = scalar_lea.hbm %s3269_s3, 1024 }
 0x274   :  { %p2878_p5 = scmp.ne.s32.totalorder %s3269_s3, %s2877_s20  ;;  %p2881_p6 = scmp.lt.u32.totalorder %s2877_s20, %s3269_s3 }
 0x276   :  { %p2883_p7 = pnand %p2881_p6, %p2878_p5 }
 0x278   :  { %2886 = shalt.err (!%p2883_p7)
}
 0x279   :  { %s2895_s25 = smov 128  }
 0x27a   :  { %2385 = dma.vmem_to_hbm [thread:$0]  %s2380_s16, 1024, %s3269_s3, [#allocation4], %s2895_s25, %s2895_s25, %s2892_s2  }
 0x27b   :  { %2887 = dma.done.wait [#allocation4], 1024  }
 0x27c   :  { %2888 = vsyncadd [#allocation4], 4294966272 }
 0x27d   :  { %2389 = vsyncpa [#allocation4], 1 }

</bundles_post_ra>
